<compile_context>
chip_gen: v5e
topology: v5e:2x2
jax: 0.10.0
libtpu: 0.0.40
codegen_flags: <defaults>
</compile_context>

<pallas_src>
import math

import jax
import jax.numpy as jnp
from jax import lax
from jax.experimental import pallas as pl
from jax.experimental.pallas import tpu as pltpu


# ----------------------------------------------------------------------------
# Fused kernel: the whole layer in one invocation.
# Refs:
#   x_ref:     (L, N, E)    input, seq-first (native PyTorch MHA layout)
#   w_in_ref:  (3, H, E, D) per-head Q/K/V projection weights
#                           (1/sqrt(D) already folded into the Q block)
#   b_in_ref:  (3, H, 1, D) per-head Q/K/V projection biases (Q-scale folded)
#   w_out_ref: (H, D, E)    per-head rows of W_out^T
#   b_out_ref: (1, E)       out-projection bias
#   o_ref:     (L, N, E)    attention output, seq-first
# ----------------------------------------------------------------------------
def _meso_attn_kernel(x_ref, w_in_ref, b_in_ref, w_out_ref, b_out_ref, o_ref):
    L, N, E = x_ref.shape
    _, H, _, D = w_in_ref.shape

    x = x_ref[...]                                            # (L, N, E) f32
    b_out = b_out_ref[...]                                    # (1, E)    f32

    outs = []
    for n in range(N):                 # statically unrolled (N tiny)
        x_n = x[:, n, :]                                      # (L, E)
        acc = jnp.zeros((L, E), jnp.float32)
        for h in range(H):             # statically unrolled head loop
            # Per-head projections: leading-dim weight indexing only (no
            # lane-offset slicing of a fused QKV activation tile).
            qh = jnp.dot(x_n, w_in_ref[0, h],
                         preferred_element_type=jnp.float32) + b_in_ref[0, h]
            kh = jnp.dot(x_n, w_in_ref[1, h],
                         preferred_element_type=jnp.float32) + b_in_ref[1, h]
            vh = jnp.dot(x_n, w_in_ref[2, h],
                         preferred_element_type=jnp.float32) + b_in_ref[2, h]

            # Scores: contract D of q against D of k directly (no K transpose).
            s = lax.dot_general(qh, kh, (((1,), (1,)), ((), ())),
                                preferred_element_type=jnp.float32)   # (L, L)

            # Numerically-stable, *exact* softmax in f32.
            s = s - jnp.max(s, axis=-1, keepdims=True)
            p = jnp.exp(s)
            p = p / jnp.sum(p, axis=-1, keepdims=True)

            head = jnp.dot(p, vh,
                           preferred_element_type=jnp.float32)        # (L, D)

            # Per-head out-projection accumulation (replaces concat + matmul).
            acc = acc + jnp.dot(head, w_out_ref[h],
                                preferred_element_type=jnp.float32)   # (L, E)

        outs.append((acc + b_out).astype(o_ref.dtype))                # (L, E)

    # Single full-block store in the native seq-first layout.
    o_ref[...] = jnp.stack(outs, axis=1)                              # (L, N, E)


def meso_attention(x_lne, w_in_heads, b_in_heads, w_out_heads, b_out):
    """x_lne: (L, N, E) seq-first. Returns (L, N, E)."""
    L, N, E = x_lne.shape
    _, H, _, D = w_in_heads.shape

    flops = N * (2 * L * E * 3 * E            # Q/K/V projections
                 + H * (2 * L * L * D) * 2    # QK^T and PV
                 + 2 * L * E * E)             # out-projection
    bytes_accessed = 4 * (x_lne.size + w_in_heads.size + b_in_heads.size
                          + w_out_heads.size + b_out.size + x_lne.size)
    cost = pl.CostEstimate(flops=flops, transcendentals=N * H * L * L,
                           bytes_accessed=bytes_accessed)

    return pl.pallas_call(
        _meso_attn_kernel,
        out_shape=jax.ShapeDtypeStruct((L, N, E), x_lne.dtype),
        grid=(1,),
        in_specs=[
            pl.BlockSpec((L, N, E), lambda i: (0, 0, 0)),        # x (full block)
            pl.BlockSpec((3, H, E, D), lambda i: (0, 0, 0, 0)),  # per-head Wqkv
            pl.BlockSpec((3, H, 1, D), lambda i: (0, 0, 0, 0)),  # per-head bqkv
            pl.BlockSpec((H, D, E), lambda i: (0, 0, 0)),        # per-head Wout
            pl.BlockSpec((1, E), lambda i: (0, 0)),              # bout
        ],
        out_specs=pl.BlockSpec((L, N, E), lambda i: (0, 0, 0)),
        cost_estimate=cost,
    )(x_lne, w_in_heads, b_in_heads, w_out_heads, b_out)


# ----------------------------------------------------------------------------
# MesoLayer forward (thin JAX glue around the single fused Pallas kernel)
# ----------------------------------------------------------------------------
class MesoLayerPallas:
    def __init__(self, subgraph_num, num_heads, coordinate, trainable_vector, key):
        self.subgraph_num = subgraph_num
        self.num_heads = num_heads
        self.coordinate = coordinate
        E = trainable_vector
        H = num_heads
        D = E // H
        self.embed_dim = E
        self.head_dim = D
        assert D * H == E

        k1, k2, k3, k4 = jax.random.split(key, 4)
        # Deterministic synthetic parameters (shapes match nn.MultiheadAttention).
        bound = 1.0 / (E ** 0.5)
        self.in_proj_weight = jax.random.uniform(
            k1, (3 * E, E), jnp.float32, -bound, bound)
        self.in_proj_bias = jax.random.uniform(
            k2, (3 * E,), jnp.float32, -bound, bound)
        self.out_proj_weight = jax.random.uniform(
            k3, (E, E), jnp.float32, -bound, bound)
        self.out_proj_bias = jax.random.uniform(
            k4, (E,), jnp.float32, -bound, bound)

        # --- weight prep hoisted to __init__: computed ONCE, not per call ---
        scale = 1.0 / math.sqrt(D)
        wq = self.in_proj_weight[0:E] * scale        # fold 1/sqrt(D) into W_q
        wk = self.in_proj_weight[E:2 * E]
        wv = self.in_proj_weight[2 * E:3 * E]
        bq = self.in_proj_bias[0:E] * scale          # ... and into b_q
        bk = self.in_proj_bias[E:2 * E]
        bv = self.in_proj_bias[2 * E:3 * E]

        def per_head(w):  # (E_out, E_in) -> (H, E_in, D)
            return jnp.transpose(w.reshape(H, D, E), (0, 2, 1))

        self.w_in_heads = jnp.stack([per_head(wq), per_head(wk), per_head(wv)])
        self.b_in_heads = jnp.stack([bq.reshape(H, 1, D),
                                     bk.reshape(H, 1, D),
                                     bv.reshape(H, 1, D)])
        self.w_out_heads = self.out_proj_weight.T.reshape(H, D, E)
        self.b_out = self.out_proj_bias.reshape(1, E)

    def __call__(self, x, coor):
        # x: (L, N, E) seq-first, like PyTorch nn.MultiheadAttention default.
        L, N, E = x.shape
        attn_output = meso_attention(x, self.w_in_heads, self.b_in_heads,
                                     self.w_out_heads, self.b_out)   # (L, N, E)

        # coor.unsqueeze(0).repeat(x.size(0), 1, 1): pure broadcast, no compute.
        coor_expanded = jnp.broadcast_to(coor[None, :, :], (L,) + coor.shape)
        return attn_output, coor_expanded


# ----------------------------------------------------------------------------
# Pure-JAX reference (mirrors torch.nn.MultiheadAttention math)
# ----------------------------------------------------------------------------
def reference_forward(layer, x, coor):
    L, N, E = x.shape
    H, D = layer.num_heads, layer.head_dim
    hp = lax.Precision.HIGHEST
    qkv = jnp.dot(x.reshape(L * N, E), layer.in_proj_weight.T,
                  precision=hp) + layer.in_proj_bias
    q, k, v = jnp.split(qkv.reshape(L, N, 3 * E), 3, axis=-1)
    to_heads = lambda t: jnp.transpose(t.reshape(L, N * H, D), (1, 0, 2))
    qh, kh, vh = to_heads(q), to_heads(k), to_heads(v)
    s = jnp.einsum("bld,bmd->blm", qh, kh, precision=hp) / (D ** 0.5)
    p = jax.nn.softmax(s, axis=-1)
    a = jnp.einsum("blm,bmd->bld", p, vh, precision=hp)
    a = jnp.transpose(a, (1, 0, 2)).reshape(L * N, E)
    out = (jnp.dot(a, layer.out_proj_weight.T, precision=hp)
           + layer.out_proj_bias).reshape(L, N, E)
    return out, jnp.broadcast_to(coor[None], (L,) + coor.shape)


if __name__ == "__main__":
    key = jax.random.PRNGKey(0)
    k_params, k_x, k_coor = jax.random.split(key, 3)

    # Small shapes: seq L=8, batch N=2, embed E=32, heads=4, coor (P=16, C=2).
    L, N, E, H = 8, 2, 32, 4
    P, C = 16, 2

    layer = MesoLayerPallas(subgraph_num=3, num_heads=H, coordinate=None,
                            trainable_vector=E, key=k_params)

    x = jax.random.normal(k_x, (L, N, E), jnp.float32)
    coor = jax.random.normal(k_coor, (P, C), jnp.float32)

    attn_out, coor_exp = layer(x, coor)
    attn_out = jax.block_until_ready(attn_out)
    coor_exp = jax.block_until_ready(coor_exp)

    ref_attn, ref_coor = reference_forward(layer, x, coor)
    assert attn_out.shape == (L, N, E)
    assert coor_exp.shape == (L, P, C)
    # All-f32 kernel with exact softmax: tight tolerance (only op-order /
    # MXU f32 pass differences remain).
    assert jnp.allclose(attn_out, ref_attn, atol=1e-3, rtol=1e-3)
    assert jnp.allclose(coor_exp, ref_coor)

    print("KERNEL_OK")
</pallas_src>

<mosaic_0001>
module attributes {stable_mosaic.version = 11 : i64} {
  func.func @_meso_attn_kernel(%arg0: i32, %arg1: memref<8x2x32xf32, #tpu.memory_space<vmem>>, %arg2: memref<3x4x32x8xf32, #tpu.memory_space<vmem>>, %arg3: memref<3x4x1x8xf32, #tpu.memory_space<vmem>>, %arg4: memref<4x8x32xf32, #tpu.memory_space<vmem>>, %arg5: memref<1x32xf32, #tpu.memory_space<vmem>>, %arg6: memref<8x2x32xf32, #tpu.memory_space<vmem>>) attributes {dimension_semantics = [#tpu.dimension_semantics<arbitrary>], iteration_bounds = array<i64: 1>, scalar_prefetch = 0 : i64, scratch_operands = 0 : i64, tpu.core_type = #tpu.core_type<tc>, window_params = [{pipeline_mode = #tpu.pipeline_mode<synchronous>, transform_indices = @transform_0, window_bounds = array<i64: 8, 2, 32>}, {pipeline_mode = #tpu.pipeline_mode<synchronous>, transform_indices = @transform_1, window_bounds = array<i64: 3, 4, 32, 8>}, {pipeline_mode = #tpu.pipeline_mode<synchronous>, transform_indices = @transform_2, window_bounds = array<i64: 3, 4, 1, 8>}, {pipeline_mode = #tpu.pipeline_mode<synchronous>, transform_indices = @transform_3, window_bounds = array<i64: 4, 8, 32>}, {pipeline_mode = #tpu.pipeline_mode<synchronous>, transform_indices = @transform_4, window_bounds = array<i64: 1, 32>}, {pipeline_mode = #tpu.pipeline_mode<synchronous>, transform_indices = @transform_5, window_bounds = array<i64: 8, 2, 32>}]} {
    %c0 = arith.constant 0 : index
    %c0_0 = arith.constant 0 : index
    %c0_1 = arith.constant 0 : index
    %0 = vector.load %arg1[%c0, %c0_0, %c0_1] : memref<8x2x32xf32, #tpu.memory_space<vmem>>, vector<8x2x32xf32>
    %c0_2 = arith.constant 0 : index
    %c0_3 = arith.constant 0 : index
    %1 = vector.load %arg5[%c0_2, %c0_3] : memref<1x32xf32, #tpu.memory_space<vmem>>, vector<1x32xf32>
    %2 = vector.extract_strided_slice %0 {offsets = [0, 0, 0], sizes = [8, 1, 32], strides = [1, 1, 1]} : vector<8x2x32xf32> to vector<8x1x32xf32>
    %3 = vector.shape_cast %2 : vector<8x1x32xf32> to vector<8x32xf32>
    %cst = arith.constant 0.000000e+00 : f32
    %4 = vector.broadcast %cst : f32 to vector<8x32xf32>
    %c0_4 = arith.constant 0 : index
    %c0_5 = arith.constant 0 : index
    %c0_6 = arith.constant 0 : index
    %c0_7 = arith.constant 0 : index
    %5 = vector.load %arg2[%c0_4, %c0_5, %c0_6, %c0_7] : memref<3x4x32x8xf32, #tpu.memory_space<vmem>>, vector<1x1x32x8xf32>
    %6 = vector.shape_cast %5 : vector<1x1x32x8xf32> to vector<32x8xf32>
    %cst_8 = arith.constant dense<0.000000e+00> : vector<8x8xf32>
    %7 = tpu.matmul %3, %6, %cst_8 {dimension_numbers = #tpu.dot_dimension_numbers<[1], [0], [0], [1], [0, 0, 1, 1], [], []>} : vector<8x32xf32>, vector<32x8xf32>, vector<8x8xf32> -> vector<8x8xf32>
    %c0_9 = arith.constant 0 : index
    %c0_10 = arith.constant 0 : index
    %c0_11 = arith.constant 0 : index
    %c0_12 = arith.constant 0 : index
    %8 = vector.load %arg3[%c0_9, %c0_10, %c0_11, %c0_12] : memref<3x4x1x8xf32, #tpu.memory_space<vmem>>, vector<1x1x1x8xf32>
    %9 = vector.shape_cast %8 : vector<1x1x1x8xf32> to vector<1x8xf32>
    %10 = vector.broadcast %9 : vector<1x8xf32> to vector<8x8xf32>
    %11 = arith.addf %7, %10 : vector<8x8xf32>
    %c1 = arith.constant 1 : index
    %c0_13 = arith.constant 0 : index
    %c0_14 = arith.constant 0 : index
    %c0_15 = arith.constant 0 : index
    %12 = vector.load %arg2[%c1, %c0_13, %c0_14, %c0_15] : memref<3x4x32x8xf32, #tpu.memory_space<vmem>>, vector<1x1x32x8xf32>
    %13 = vector.shape_cast %12 : vector<1x1x32x8xf32> to vector<32x8xf32>
    %cst_16 = arith.constant dense<0.000000e+00> : vector<8x8xf32>
    %14 = tpu.matmul %3, %13, %cst_16 {dimension_numbers = #tpu.dot_dimension_numbers<[1], [0], [0], [1], [0, 0, 1, 1], [], []>} : vector<8x32xf32>, vector<32x8xf32>, vector<8x8xf32> -> vector<8x8xf32>
    %c1_17 = arith.constant 1 : index
    %c0_18 = arith.constant 0 : index
    %c0_19 = arith.constant 0 : index
    %c0_20 = arith.constant 0 : index
    %15 = vector.load %arg3[%c1_17, %c0_18, %c0_19, %c0_20] : memref<3x4x1x8xf32, #tpu.memory_space<vmem>>, vector<1x1x1x8xf32>
    %16 = vector.shape_cast %15 : vector<1x1x1x8xf32> to vector<1x8xf32>
    %17 = vector.broadcast %16 : vector<1x8xf32> to vector<8x8xf32>
    %18 = arith.addf %14, %17 : vector<8x8xf32>
    %c2 = arith.constant 2 : index
    %c0_21 = arith.constant 0 : index
    %c0_22 = arith.constant 0 : index
    %c0_23 = arith.constant 0 : index
    %19 = vector.load %arg2[%c2, %c0_21, %c0_22, %c0_23] : memref<3x4x32x8xf32, #tpu.memory_space<vmem>>, vector<1x1x32x8xf32>
    %20 = vector.shape_cast %19 : vector<1x1x32x8xf32> to vector<32x8xf32>
    %cst_24 = arith.constant dense<0.000000e+00> : vector<8x8xf32>
    %21 = tpu.matmul %3, %20, %cst_24 {dimension_numbers = #tpu.dot_dimension_numbers<[1], [0], [0], [1], [0, 0, 1, 1], [], []>} : vector<8x32xf32>, vector<32x8xf32>, vector<8x8xf32> -> vector<8x8xf32>
    %c2_25 = arith.constant 2 : index
    %c0_26 = arith.constant 0 : index
    %c0_27 = arith.constant 0 : index
    %c0_28 = arith.constant 0 : index
    %22 = vector.load %arg3[%c2_25, %c0_26, %c0_27, %c0_28] : memref<3x4x1x8xf32, #tpu.memory_space<vmem>>, vector<1x1x1x8xf32>
    %23 = vector.shape_cast %22 : vector<1x1x1x8xf32> to vector<1x8xf32>
    %24 = vector.broadcast %23 : vector<1x8xf32> to vector<8x8xf32>
    %25 = arith.addf %21, %24 : vector<8x8xf32>
    %cst_29 = arith.constant dense<0.000000e+00> : vector<8x8xf32>
    %26 = tpu.matmul %11, %18, %cst_29 {dimension_numbers = #tpu.dot_dimension_numbers<[1], [1], [0], [0], [0, 0, 1, 0], [], []>} : vector<8x8xf32>, vector<8x8xf32>, vector<8x8xf32> -> vector<8x8xf32>
    %cst_30 = arith.constant dense<0xFF800000> : vector<8xf32>
    %27 = vector.multi_reduction <maximumf>, %26, %cst_30 [1] : vector<8x8xf32> to vector<8xf32>
    %28 = vector.shape_cast %27 : vector<8xf32> to vector<8x1xf32>
    %29 = vector.broadcast %28 : vector<8x1xf32> to vector<8x8xf32>
    %30 = arith.subf %26, %29 : vector<8x8xf32>
    %31 = math.exp %30 : vector<8x8xf32>
    %cst_31 = arith.constant dense<0.000000e+00> : vector<8xf32>
    %32 = vector.multi_reduction <add>, %31, %cst_31 [1] : vector<8x8xf32> to vector<8xf32>
    %33 = vector.shape_cast %32 : vector<8xf32> to vector<8x1xf32>
    %34 = vector.broadcast %33 : vector<8x1xf32> to vector<8x8xf32>
    %35 = arith.divf %31, %34 : vector<8x8xf32>
    %cst_32 = arith.constant dense<0.000000e+00> : vector<8x8xf32>
    %36 = tpu.matmul %35, %25, %cst_32 {dimension_numbers = #tpu.dot_dimension_numbers<[1], [0], [0], [1], [0, 0, 1, 1], [], []>} : vector<8x8xf32>, vector<8x8xf32>, vector<8x8xf32> -> vector<8x8xf32>
    %c0_33 = arith.constant 0 : index
    %c0_34 = arith.constant 0 : index
    %c0_35 = arith.constant 0 : index
    %37 = vector.load %arg4[%c0_33, %c0_34, %c0_35] : memref<4x8x32xf32, #tpu.memory_space<vmem>>, vector<1x8x32xf32>
    %38 = vector.shape_cast %37 : vector<1x8x32xf32> to vector<8x32xf32>
    %cst_36 = arith.constant dense<0.000000e+00> : vector<8x32xf32>
    %39 = tpu.matmul %36, %38, %cst_36 {dimension_numbers = #tpu.dot_dimension_numbers<[1], [0], [0], [1], [0, 0, 1, 1], [], []>} : vector<8x8xf32>, vector<8x32xf32>, vector<8x32xf32> -> vector<8x32xf32>
    %40 = arith.addf %4, %39 : vector<8x32xf32>
    %c0_37 = arith.constant 0 : index
    %c1_38 = arith.constant 1 : index
    %c0_39 = arith.constant 0 : index
    %c0_40 = arith.constant 0 : index
    %41 = vector.load %arg2[%c0_37, %c1_38, %c0_39, %c0_40] : memref<3x4x32x8xf32, #tpu.memory_space<vmem>>, vector<1x1x32x8xf32>
    %42 = vector.shape_cast %41 : vector<1x1x32x8xf32> to vector<32x8xf32>
    %cst_41 = arith.constant dense<0.000000e+00> : vector<8x8xf32>
    %43 = tpu.matmul %3, %42, %cst_41 {dimension_numbers = #tpu.dot_dimension_numbers<[1], [0], [0], [1], [0, 0, 1, 1], [], []>} : vector<8x32xf32>, vector<32x8xf32>, vector<8x8xf32> -> vector<8x8xf32>
    %c0_42 = arith.constant 0 : index
    %c1_43 = arith.constant 1 : index
    %c0_44 = arith.constant 0 : index
    %c0_45 = arith.constant 0 : index
    %44 = vector.load %arg3[%c0_42, %c1_43, %c0_44, %c0_45] : memref<3x4x1x8xf32, #tpu.memory_space<vmem>>, vector<1x1x1x8xf32>
    %45 = vector.shape_cast %44 : vector<1x1x1x8xf32> to vector<1x8xf32>
    %46 = vector.broadcast %45 : vector<1x8xf32> to vector<8x8xf32>
    %47 = arith.addf %43, %46 : vector<8x8xf32>
    %c1_46 = arith.constant 1 : index
    %c1_47 = arith.constant 1 : index
    %c0_48 = arith.constant 0 : index
    %c0_49 = arith.constant 0 : index
    %48 = vector.load %arg2[%c1_46, %c1_47, %c0_48, %c0_49] : memref<3x4x32x8xf32, #tpu.memory_space<vmem>>, vector<1x1x32x8xf32>
    %49 = vector.shape_cast %48 : vector<1x1x32x8xf32> to vector<32x8xf32>
    %cst_50 = arith.constant dense<0.000000e+00> : vector<8x8xf32>
    %50 = tpu.matmul %3, %49, %cst_50 {dimension_numbers = #tpu.dot_dimension_numbers<[1], [0], [0], [1], [0, 0, 1, 1], [], []>} : vector<8x32xf32>, vector<32x8xf32>, vector<8x8xf32> -> vector<8x8xf32>
    %c1_51 = arith.constant 1 : index
    %c1_52 = arith.constant 1 : index
    %c0_53 = arith.constant 0 : index
    %c0_54 = arith.constant 0 : index
    %51 = vector.load %arg3[%c1_51, %c1_52, %c0_53, %c0_54] : memref<3x4x1x8xf32, #tpu.memory_space<vmem>>, vector<1x1x1x8xf32>
    %52 = vector.shape_cast %51 : vector<1x1x1x8xf32> to vector<1x8xf32>
    %53 = vector.broadcast %52 : vector<1x8xf32> to vector<8x8xf32>
    %54 = arith.addf %50, %53 : vector<8x8xf32>
    %c2_55 = arith.constant 2 : index
    %c1_56 = arith.constant 1 : index
    %c0_57 = arith.constant 0 : index
    %c0_58 = arith.constant 0 : index
    %55 = vector.load %arg2[%c2_55, %c1_56, %c0_57, %c0_58] : memref<3x4x32x8xf32, #tpu.memory_space<vmem>>, vector<1x1x32x8xf32>
    %56 = vector.shape_cast %55 : vector<1x1x32x8xf32> to vector<32x8xf32>
    %cst_59 = arith.constant dense<0.000000e+00> : vector<8x8xf32>
    %57 = tpu.matmul %3, %56, %cst_59 {dimension_numbers = #tpu.dot_dimension_numbers<[1], [0], [0], [1], [0, 0, 1, 1], [], []>} : vector<8x32xf32>, vector<32x8xf32>, vector<8x8xf32> -> vector<8x8xf32>
    %c2_60 = arith.constant 2 : index
    %c1_61 = arith.constant 1 : index
    %c0_62 = arith.constant 0 : index
    %c0_63 = arith.constant 0 : index
    %58 = vector.load %arg3[%c2_60, %c1_61, %c0_62, %c0_63] : memref<3x4x1x8xf32, #tpu.memory_space<vmem>>, vector<1x1x1x8xf32>
    %59 = vector.shape_cast %58 : vector<1x1x1x8xf32> to vector<1x8xf32>
    %60 = vector.broadcast %59 : vector<1x8xf32> to vector<8x8xf32>
    %61 = arith.addf %57, %60 : vector<8x8xf32>
    %cst_64 = arith.constant dense<0.000000e+00> : vector<8x8xf32>
    %62 = tpu.matmul %47, %54, %cst_64 {dimension_numbers = #tpu.dot_dimension_numbers<[1], [1], [0], [0], [0, 0, 1, 0], [], []>} : vector<8x8xf32>, vector<8x8xf32>, vector<8x8xf32> -> vector<8x8xf32>
    %cst_65 = arith.constant dense<0xFF800000> : vector<8xf32>
    %63 = vector.multi_reduction <maximumf>, %62, %cst_65 [1] : vector<8x8xf32> to vector<8xf32>
    %64 = vector.shape_cast %63 : vector<8xf32> to vector<8x1xf32>
    %65 = vector.broadcast %64 : vector<8x1xf32> to vector<8x8xf32>
    %66 = arith.subf %62, %65 : vector<8x8xf32>
    %67 = math.exp %66 : vector<8x8xf32>
    %cst_66 = arith.constant dense<0.000000e+00> : vector<8xf32>
    %68 = vector.multi_reduction <add>, %67, %cst_66 [1] : vector<8x8xf32> to vector<8xf32>
    %69 = vector.shape_cast %68 : vector<8xf32> to vector<8x1xf32>
    %70 = vector.broadcast %69 : vector<8x1xf32> to vector<8x8xf32>
    %71 = arith.divf %67, %70 : vector<8x8xf32>
    %cst_67 = arith.constant dense<0.000000e+00> : vector<8x8xf32>
    %72 = tpu.matmul %71, %61, %cst_67 {dimension_numbers = #tpu.dot_dimension_numbers<[1], [0], [0], [1], [0, 0, 1, 1], [], []>} : vector<8x8xf32>, vector<8x8xf32>, vector<8x8xf32> -> vector<8x8xf32>
    %c1_68 = arith.constant 1 : index
    %c0_69 = arith.constant 0 : index
    %c0_70 = arith.constant 0 : index
    %73 = vector.load %arg4[%c1_68, %c0_69, %c0_70] : memref<4x8x32xf32, #tpu.memory_space<vmem>>, vector<1x8x32xf32>
    %74 = vector.shape_cast %73 : vector<1x8x32xf32> to vector<8x32xf32>
    %cst_71 = arith.constant dense<0.000000e+00> : vector<8x32xf32>
    %75 = tpu.matmul %72, %74, %cst_71 {dimension_numbers = #tpu.dot_dimension_numbers<[1], [0], [0], [1], [0, 0, 1, 1], [], []>} : vector<8x8xf32>, vector<8x32xf32>, vector<8x32xf32> -> vector<8x32xf32>
    %76 = arith.addf %40, %75 : vector<8x32xf32>
    %c0_72 = arith.constant 0 : index
    %c2_73 = arith.constant 2 : index
    %c0_74 = arith.constant 0 : index
    %c0_75 = arith.constant 0 : index
    %77 = vector.load %arg2[%c0_72, %c2_73, %c0_74, %c0_75] : memref<3x4x32x8xf32, #tpu.memory_space<vmem>>, vector<1x1x32x8xf32>
    %78 = vector.shape_cast %77 : vector<1x1x32x8xf32> to vector<32x8xf32>
    %cst_76 = arith.constant dense<0.000000e+00> : vector<8x8xf32>
    %79 = tpu.matmul %3, %78, %cst_76 {dimension_numbers = #tpu.dot_dimension_numbers<[1], [0], [0], [1], [0, 0, 1, 1], [], []>} : vector<8x32xf32>, vector<32x8xf32>, vector<8x8xf32> -> vector<8x8xf32>
    %c0_77 = arith.constant 0 : index
    %c2_78 = arith.constant 2 : index
    %c0_79 = arith.constant 0 : index
    %c0_80 = arith.constant 0 : index
    %80 = vector.load %arg3[%c0_77, %c2_78, %c0_79, %c0_80] : memref<3x4x1x8xf32, #tpu.memory_space<vmem>>, vector<1x1x1x8xf32>
    %81 = vector.shape_cast %80 : vector<1x1x1x8xf32> to vector<1x8xf32>
    %82 = vector.broadcast %81 : vector<1x8xf32> to vector<8x8xf32>
    %83 = arith.addf %79, %82 : vector<8x8xf32>
    %c1_81 = arith.constant 1 : index
    %c2_82 = arith.constant 2 : index
    %c0_83 = arith.constant 0 : index
    %c0_84 = arith.constant 0 : index
    %84 = vector.load %arg2[%c1_81, %c2_82, %c0_83, %c0_84] : memref<3x4x32x8xf32, #tpu.memory_space<vmem>>, vector<1x1x32x8xf32>
    %85 = vector.shape_cast %84 : vector<1x1x32x8xf32> to vector<32x8xf32>
    %cst_85 = arith.constant dense<0.000000e+00> : vector<8x8xf32>
    %86 = tpu.matmul %3, %85, %cst_85 {dimension_numbers = #tpu.dot_dimension_numbers<[1], [0], [0], [1], [0, 0, 1, 1], [], []>} : vector<8x32xf32>, vector<32x8xf32>, vector<8x8xf32> -> vector<8x8xf32>
    %c1_86 = arith.constant 1 : index
    %c2_87 = arith.constant 2 : index
    %c0_88 = arith.constant 0 : index
    %c0_89 = arith.constant 0 : index
    %87 = vector.load %arg3[%c1_86, %c2_87, %c0_88, %c0_89] : memref<3x4x1x8xf32, #tpu.memory_space<vmem>>, vector<1x1x1x8xf32>
    %88 = vector.shape_cast %87 : vector<1x1x1x8xf32> to vector<1x8xf32>
    %89 = vector.broadcast %88 : vector<1x8xf32> to vector<8x8xf32>
    %90 = arith.addf %86, %89 : vector<8x8xf32>
    %c2_90 = arith.constant 2 : index
    %c2_91 = arith.constant 2 : index
    %c0_92 = arith.constant 0 : index
    %c0_93 = arith.constant 0 : index
    %91 = vector.load %arg2[%c2_90, %c2_91, %c0_92, %c0_93] : memref<3x4x32x8xf32, #tpu.memory_space<vmem>>, vector<1x1x32x8xf32>
    %92 = vector.shape_cast %91 : vector<1x1x32x8xf32> to vector<32x8xf32>
    %cst_94 = arith.constant dense<0.000000e+00> : vector<8x8xf32>
    %93 = tpu.matmul %3, %92, %cst_94 {dimension_numbers = #tpu.dot_dimension_numbers<[1], [0], [0], [1], [0, 0, 1, 1], [], []>} : vector<8x32xf32>, vector<32x8xf32>, vector<8x8xf32> -> vector<8x8xf32>
    %c2_95 = arith.constant 2 : index
    %c2_96 = arith.constant 2 : index
    %c0_97 = arith.constant 0 : index
    %c0_98 = arith.constant 0 : index
    %94 = vector.load %arg3[%c2_95, %c2_96, %c0_97, %c0_98] : memref<3x4x1x8xf32, #tpu.memory_space<vmem>>, vector<1x1x1x8xf32>
    %95 = vector.shape_cast %94 : vector<1x1x1x8xf32> to vector<1x8xf32>
    %96 = vector.broadcast %95 : vector<1x8xf32> to vector<8x8xf32>
    %97 = arith.addf %93, %96 : vector<8x8xf32>
    %cst_99 = arith.constant dense<0.000000e+00> : vector<8x8xf32>
    %98 = tpu.matmul %83, %90, %cst_99 {dimension_numbers = #tpu.dot_dimension_numbers<[1], [1], [0], [0], [0, 0, 1, 0], [], []>} : vector<8x8xf32>, vector<8x8xf32>, vector<8x8xf32> -> vector<8x8xf32>
    %cst_100 = arith.constant dense<0xFF800000> : vector<8xf32>
    %99 = vector.multi_reduction <maximumf>, %98, %cst_100 [1] : vector<8x8xf32> to vector<8xf32>
    %100 = vector.shape_cast %99 : vector<8xf32> to vector<8x1xf32>
    %101 = vector.broadcast %100 : vector<8x1xf32> to vector<8x8xf32>
    %102 = arith.subf %98, %101 : vector<8x8xf32>
    %103 = math.exp %102 : vector<8x8xf32>
    %cst_101 = arith.constant dense<0.000000e+00> : vector<8xf32>
    %104 = vector.multi_reduction <add>, %103, %cst_101 [1] : vector<8x8xf32> to vector<8xf32>
    %105 = vector.shape_cast %104 : vector<8xf32> to vector<8x1xf32>
    %106 = vector.broadcast %105 : vector<8x1xf32> to vector<8x8xf32>
    %107 = arith.divf %103, %106 : vector<8x8xf32>
    %cst_102 = arith.constant dense<0.000000e+00> : vector<8x8xf32>
    %108 = tpu.matmul %107, %97, %cst_102 {dimension_numbers = #tpu.dot_dimension_numbers<[1], [0], [0], [1], [0, 0, 1, 1], [], []>} : vector<8x8xf32>, vector<8x8xf32>, vector<8x8xf32> -> vector<8x8xf32>
    %c2_103 = arith.constant 2 : index
    %c0_104 = arith.constant 0 : index
    %c0_105 = arith.constant 0 : index
    %109 = vector.load %arg4[%c2_103, %c0_104, %c0_105] : memref<4x8x32xf32, #tpu.memory_space<vmem>>, vector<1x8x32xf32>
    %110 = vector.shape_cast %109 : vector<1x8x32xf32> to vector<8x32xf32>
    %cst_106 = arith.constant dense<0.000000e+00> : vector<8x32xf32>
    %111 = tpu.matmul %108, %110, %cst_106 {dimension_numbers = #tpu.dot_dimension_numbers<[1], [0], [0], [1], [0, 0, 1, 1], [], []>} : vector<8x8xf32>, vector<8x32xf32>, vector<8x32xf32> -> vector<8x32xf32>
    %112 = arith.addf %76, %111 : vector<8x32xf32>
    %c0_107 = arith.constant 0 : index
    %c3 = arith.constant 3 : index
    %c0_108 = arith.constant 0 : index
    %c0_109 = arith.constant 0 : index
    %113 = vector.load %arg2[%c0_107, %c3, %c0_108, %c0_109] : memref<3x4x32x8xf32, #tpu.memory_space<vmem>>, vector<1x1x32x8xf32>
    %114 = vector.shape_cast %113 : vector<1x1x32x8xf32> to vector<32x8xf32>
    %cst_110 = arith.constant dense<0.000000e+00> : vector<8x8xf32>
    %115 = tpu.matmul %3, %114, %cst_110 {dimension_numbers = #tpu.dot_dimension_numbers<[1], [0], [0], [1], [0, 0, 1, 1], [], []>} : vector<8x32xf32>, vector<32x8xf32>, vector<8x8xf32> -> vector<8x8xf32>
    %c0_111 = arith.constant 0 : index
    %c3_112 = arith.constant 3 : index
    %c0_113 = arith.constant 0 : index
    %c0_114 = arith.constant 0 : index
    %116 = vector.load %arg3[%c0_111, %c3_112, %c0_113, %c0_114] : memref<3x4x1x8xf32, #tpu.memory_space<vmem>>, vector<1x1x1x8xf32>
    %117 = vector.shape_cast %116 : vector<1x1x1x8xf32> to vector<1x8xf32>
    %118 = vector.broadcast %117 : vector<1x8xf32> to vector<8x8xf32>
    %119 = arith.addf %115, %118 : vector<8x8xf32>
    %c1_115 = arith.constant 1 : index
    %c3_116 = arith.constant 3 : index
    %c0_117 = arith.constant 0 : index
    %c0_118 = arith.constant 0 : index
    %120 = vector.load %arg2[%c1_115, %c3_116, %c0_117, %c0_118] : memref<3x4x32x8xf32, #tpu.memory_space<vmem>>, vector<1x1x32x8xf32>
    %121 = vector.shape_cast %120 : vector<1x1x32x8xf32> to vector<32x8xf32>
    %cst_119 = arith.constant dense<0.000000e+00> : vector<8x8xf32>
    %122 = tpu.matmul %3, %121, %cst_119 {dimension_numbers = #tpu.dot_dimension_numbers<[1], [0], [0], [1], [0, 0, 1, 1], [], []>} : vector<8x32xf32>, vector<32x8xf32>, vector<8x8xf32> -> vector<8x8xf32>
    %c1_120 = arith.constant 1 : index
    %c3_121 = arith.constant 3 : index
    %c0_122 = arith.constant 0 : index
    %c0_123 = arith.constant 0 : index
    %123 = vector.load %arg3[%c1_120, %c3_121, %c0_122, %c0_123] : memref<3x4x1x8xf32, #tpu.memory_space<vmem>>, vector<1x1x1x8xf32>
    %124 = vector.shape_cast %123 : vector<1x1x1x8xf32> to vector<1x8xf32>
    %125 = vector.broadcast %124 : vector<1x8xf32> to vector<8x8xf32>
    %126 = arith.addf %122, %125 : vector<8x8xf32>
    %c2_124 = arith.constant 2 : index
    %c3_125 = arith.constant 3 : index
    %c0_126 = arith.constant 0 : index
    %c0_127 = arith.constant 0 : index
    %127 = vector.load %arg2[%c2_124, %c3_125, %c0_126, %c0_127] : memref<3x4x32x8xf32, #tpu.memory_space<vmem>>, vector<1x1x32x8xf32>
    %128 = vector.shape_cast %127 : vector<1x1x32x8xf32> to vector<32x8xf32>
    %cst_128 = arith.constant dense<0.000000e+00> : vector<8x8xf32>
    %129 = tpu.matmul %3, %128, %cst_128 {dimension_numbers = #tpu.dot_dimension_numbers<[1], [0], [0], [1], [0, 0, 1, 1], [], []>} : vector<8x32xf32>, vector<32x8xf32>, vector<8x8xf32> -> vector<8x8xf32>
    %c2_129 = arith.constant 2 : index
    %c3_130 = arith.constant 3 : index
    %c0_131 = arith.constant 0 : index
    %c0_132 = arith.constant 0 : index
    %130 = vector.load %arg3[%c2_129, %c3_130, %c0_131, %c0_132] : memref<3x4x1x8xf32, #tpu.memory_space<vmem>>, vector<1x1x1x8xf32>
    %131 = vector.shape_cast %130 : vector<1x1x1x8xf32> to vector<1x8xf32>
    %132 = vector.broadcast %131 : vector<1x8xf32> to vector<8x8xf32>
    %133 = arith.addf %129, %132 : vector<8x8xf32>
    %cst_133 = arith.constant dense<0.000000e+00> : vector<8x8xf32>
    %134 = tpu.matmul %119, %126, %cst_133 {dimension_numbers = #tpu.dot_dimension_numbers<[1], [1], [0], [0], [0, 0, 1, 0], [], []>} : vector<8x8xf32>, vector<8x8xf32>, vector<8x8xf32> -> vector<8x8xf32>
    %cst_134 = arith.constant dense<0xFF800000> : vector<8xf32>
    %135 = vector.multi_reduction <maximumf>, %134, %cst_134 [1] : vector<8x8xf32> to vector<8xf32>
    %136 = vector.shape_cast %135 : vector<8xf32> to vector<8x1xf32>
    %137 = vector.broadcast %136 : vector<8x1xf32> to vector<8x8xf32>
    %138 = arith.subf %134, %137 : vector<8x8xf32>
    %139 = math.exp %138 : vector<8x8xf32>
    %cst_135 = arith.constant dense<0.000000e+00> : vector<8xf32>
    %140 = vector.multi_reduction <add>, %139, %cst_135 [1] : vector<8x8xf32> to vector<8xf32>
    %141 = vector.shape_cast %140 : vector<8xf32> to vector<8x1xf32>
    %142 = vector.broadcast %141 : vector<8x1xf32> to vector<8x8xf32>
    %143 = arith.divf %139, %142 : vector<8x8xf32>
    %cst_136 = arith.constant dense<0.000000e+00> : vector<8x8xf32>
    %144 = tpu.matmul %143, %133, %cst_136 {dimension_numbers = #tpu.dot_dimension_numbers<[1], [0], [0], [1], [0, 0, 1, 1], [], []>} : vector<8x8xf32>, vector<8x8xf32>, vector<8x8xf32> -> vector<8x8xf32>
    %c3_137 = arith.constant 3 : index
    %c0_138 = arith.constant 0 : index
    %c0_139 = arith.constant 0 : index
    %145 = vector.load %arg4[%c3_137, %c0_138, %c0_139] : memref<4x8x32xf32, #tpu.memory_space<vmem>>, vector<1x8x32xf32>
    %146 = vector.shape_cast %145 : vector<1x8x32xf32> to vector<8x32xf32>
    %cst_140 = arith.constant dense<0.000000e+00> : vector<8x32xf32>
    %147 = tpu.matmul %144, %146, %cst_140 {dimension_numbers = #tpu.dot_dimension_numbers<[1], [0], [0], [1], [0, 0, 1, 1], [], []>} : vector<8x8xf32>, vector<8x32xf32>, vector<8x32xf32> -> vector<8x32xf32>
    %148 = arith.addf %112, %147 : vector<8x32xf32>
    %149 = vector.broadcast %1 : vector<1x32xf32> to vector<8x32xf32>
    %150 = arith.addf %148, %149 : vector<8x32xf32>
    %151 = vector.extract_strided_slice %0 {offsets = [0, 1, 0], sizes = [8, 1, 32], strides = [1, 1, 1]} : vector<8x2x32xf32> to vector<8x1x32xf32>
    %152 = vector.shape_cast %151 : vector<8x1x32xf32> to vector<8x32xf32>
    %cst_141 = arith.constant 0.000000e+00 : f32
    %153 = vector.broadcast %cst_141 : f32 to vector<8x32xf32>
    %c0_142 = arith.constant 0 : index
    %c0_143 = arith.constant 0 : index
    %c0_144 = arith.constant 0 : index
    %c0_145 = arith.constant 0 : index
    %154 = vector.load %arg2[%c0_142, %c0_143, %c0_144, %c0_145] : memref<3x4x32x8xf32, #tpu.memory_space<vmem>>, vector<1x1x32x8xf32>
    %155 = vector.shape_cast %154 : vector<1x1x32x8xf32> to vector<32x8xf32>
    %cst_146 = arith.constant dense<0.000000e+00> : vector<8x8xf32>
    %156 = tpu.matmul %152, %155, %cst_146 {dimension_numbers = #tpu.dot_dimension_numbers<[1], [0], [0], [1], [0, 0, 1, 1], [], []>} : vector<8x32xf32>, vector<32x8xf32>, vector<8x8xf32> -> vector<8x8xf32>
    %c0_147 = arith.constant 0 : index
    %c0_148 = arith.constant 0 : index
    %c0_149 = arith.constant 0 : index
    %c0_150 = arith.constant 0 : index
    %157 = vector.load %arg3[%c0_147, %c0_148, %c0_149, %c0_150] : memref<3x4x1x8xf32, #tpu.memory_space<vmem>>, vector<1x1x1x8xf32>
    %158 = vector.shape_cast %157 : vector<1x1x1x8xf32> to vector<1x8xf32>
    %159 = vector.broadcast %158 : vector<1x8xf32> to vector<8x8xf32>
    %160 = arith.addf %156, %159 : vector<8x8xf32>
    %c1_151 = arith.constant 1 : index
    %c0_152 = arith.constant 0 : index
    %c0_153 = arith.constant 0 : index
    %c0_154 = arith.constant 0 : index
    %161 = vector.load %arg2[%c1_151, %c0_152, %c0_153, %c0_154] : memref<3x4x32x8xf32, #tpu.memory_space<vmem>>, vector<1x1x32x8xf32>
    %162 = vector.shape_cast %161 : vector<1x1x32x8xf32> to vector<32x8xf32>
    %cst_155 = arith.constant dense<0.000000e+00> : vector<8x8xf32>
    %163 = tpu.matmul %152, %162, %cst_155 {dimension_numbers = #tpu.dot_dimension_numbers<[1], [0], [0], [1], [0, 0, 1, 1], [], []>} : vector<8x32xf32>, vector<32x8xf32>, vector<8x8xf32> -> vector<8x8xf32>
    %c1_156 = arith.constant 1 : index
    %c0_157 = arith.constant 0 : index
    %c0_158 = arith.constant 0 : index
    %c0_159 = arith.constant 0 : index
    %164 = vector.load %arg3[%c1_156, %c0_157, %c0_158, %c0_159] : memref<3x4x1x8xf32, #tpu.memory_space<vmem>>, vector<1x1x1x8xf32>
    %165 = vector.shape_cast %164 : vector<1x1x1x8xf32> to vector<1x8xf32>
    %166 = vector.broadcast %165 : vector<1x8xf32> to vector<8x8xf32>
    %167 = arith.addf %163, %166 : vector<8x8xf32>
    %c2_160 = arith.constant 2 : index
    %c0_161 = arith.constant 0 : index
    %c0_162 = arith.constant 0 : index
    %c0_163 = arith.constant 0 : index
    %168 = vector.load %arg2[%c2_160, %c0_161, %c0_162, %c0_163] : memref<3x4x32x8xf32, #tpu.memory_space<vmem>>, vector<1x1x32x8xf32>
    %169 = vector.shape_cast %168 : vector<1x1x32x8xf32> to vector<32x8xf32>
    %cst_164 = arith.constant dense<0.000000e+00> : vector<8x8xf32>
    %170 = tpu.matmul %152, %169, %cst_164 {dimension_numbers = #tpu.dot_dimension_numbers<[1], [0], [0], [1], [0, 0, 1, 1], [], []>} : vector<8x32xf32>, vector<32x8xf32>, vector<8x8xf32> -> vector<8x8xf32>
    %c2_165 = arith.constant 2 : index
    %c0_166 = arith.constant 0 : index
    %c0_167 = arith.constant 0 : index
    %c0_168 = arith.constant 0 : index
    %171 = vector.load %arg3[%c2_165, %c0_166, %c0_167, %c0_168] : memref<3x4x1x8xf32, #tpu.memory_space<vmem>>, vector<1x1x1x8xf32>
    %172 = vector.shape_cast %171 : vector<1x1x1x8xf32> to vector<1x8xf32>
    %173 = vector.broadcast %172 : vector<1x8xf32> to vector<8x8xf32>
    %174 = arith.addf %170, %173 : vector<8x8xf32>
    %cst_169 = arith.constant dense<0.000000e+00> : vector<8x8xf32>
    %175 = tpu.matmul %160, %167, %cst_169 {dimension_numbers = #tpu.dot_dimension_numbers<[1], [1], [0], [0], [0, 0, 1, 0], [], []>} : vector<8x8xf32>, vector<8x8xf32>, vector<8x8xf32> -> vector<8x8xf32>
    %cst_170 = arith.constant dense<0xFF800000> : vector<8xf32>
    %176 = vector.multi_reduction <maximumf>, %175, %cst_170 [1] : vector<8x8xf32> to vector<8xf32>
    %177 = vector.shape_cast %176 : vector<8xf32> to vector<8x1xf32>
    %178 = vector.broadcast %177 : vector<8x1xf32> to vector<8x8xf32>
    %179 = arith.subf %175, %178 : vector<8x8xf32>
    %180 = math.exp %179 : vector<8x8xf32>
    %cst_171 = arith.constant dense<0.000000e+00> : vector<8xf32>
    %181 = vector.multi_reduction <add>, %180, %cst_171 [1] : vector<8x8xf32> to vector<8xf32>
    %182 = vector.shape_cast %181 : vector<8xf32> to vector<8x1xf32>
    %183 = vector.broadcast %182 : vector<8x1xf32> to vector<8x8xf32>
    %184 = arith.divf %180, %183 : vector<8x8xf32>
    %cst_172 = arith.constant dense<0.000000e+00> : vector<8x8xf32>
    %185 = tpu.matmul %184, %174, %cst_172 {dimension_numbers = #tpu.dot_dimension_numbers<[1], [0], [0], [1], [0, 0, 1, 1], [], []>} : vector<8x8xf32>, vector<8x8xf32>, vector<8x8xf32> -> vector<8x8xf32>
    %c0_173 = arith.constant 0 : index
    %c0_174 = arith.constant 0 : index
    %c0_175 = arith.constant 0 : index
    %186 = vector.load %arg4[%c0_173, %c0_174, %c0_175] : memref<4x8x32xf32, #tpu.memory_space<vmem>>, vector<1x8x32xf32>
    %187 = vector.shape_cast %186 : vector<1x8x32xf32> to vector<8x32xf32>
    %cst_176 = arith.constant dense<0.000000e+00> : vector<8x32xf32>
    %188 = tpu.matmul %185, %187, %cst_176 {dimension_numbers = #tpu.dot_dimension_numbers<[1], [0], [0], [1], [0, 0, 1, 1], [], []>} : vector<8x8xf32>, vector<8x32xf32>, vector<8x32xf32> -> vector<8x32xf32>
    %189 = arith.addf %153, %188 : vector<8x32xf32>
    %c0_177 = arith.constant 0 : index
    %c1_178 = arith.constant 1 : index
    %c0_179 = arith.constant 0 : index
    %c0_180 = arith.constant 0 : index
    %190 = vector.load %arg2[%c0_177, %c1_178, %c0_179, %c0_180] : memref<3x4x32x8xf32, #tpu.memory_space<vmem>>, vector<1x1x32x8xf32>
    %191 = vector.shape_cast %190 : vector<1x1x32x8xf32> to vector<32x8xf32>
    %cst_181 = arith.constant dense<0.000000e+00> : vector<8x8xf32>
    %192 = tpu.matmul %152, %191, %cst_181 {dimension_numbers = #tpu.dot_dimension_numbers<[1], [0], [0], [1], [0, 0, 1, 1], [], []>} : vector<8x32xf32>, vector<32x8xf32>, vector<8x8xf32> -> vector<8x8xf32>
    %c0_182 = arith.constant 0 : index
    %c1_183 = arith.constant 1 : index
    %c0_184 = arith.constant 0 : index
    %c0_185 = arith.constant 0 : index
    %193 = vector.load %arg3[%c0_182, %c1_183, %c0_184, %c0_185] : memref<3x4x1x8xf32, #tpu.memory_space<vmem>>, vector<1x1x1x8xf32>
    %194 = vector.shape_cast %193 : vector<1x1x1x8xf32> to vector<1x8xf32>
    %195 = vector.broadcast %194 : vector<1x8xf32> to vector<8x8xf32>
    %196 = arith.addf %192, %195 : vector<8x8xf32>
    %c1_186 = arith.constant 1 : index
    %c1_187 = arith.constant 1 : index
    %c0_188 = arith.constant 0 : index
    %c0_189 = arith.constant 0 : index
    %197 = vector.load %arg2[%c1_186, %c1_187, %c0_188, %c0_189] : memref<3x4x32x8xf32, #tpu.memory_space<vmem>>, vector<1x1x32x8xf32>
    %198 = vector.shape_cast %197 : vector<1x1x32x8xf32> to vector<32x8xf32>
    %cst_190 = arith.constant dense<0.000000e+00> : vector<8x8xf32>
    %199 = tpu.matmul %152, %198, %cst_190 {dimension_numbers = #tpu.dot_dimension_numbers<[1], [0], [0], [1], [0, 0, 1, 1], [], []>} : vector<8x32xf32>, vector<32x8xf32>, vector<8x8xf32> -> vector<8x8xf32>
    %c1_191 = arith.constant 1 : index
    %c1_192 = arith.constant 1 : index
    %c0_193 = arith.constant 0 : index
    %c0_194 = arith.constant 0 : index
    %200 = vector.load %arg3[%c1_191, %c1_192, %c0_193, %c0_194] : memref<3x4x1x8xf32, #tpu.memory_space<vmem>>, vector<1x1x1x8xf32>
    %201 = vector.shape_cast %200 : vector<1x1x1x8xf32> to vector<1x8xf32>
    %202 = vector.broadcast %201 : vector<1x8xf32> to vector<8x8xf32>
    %203 = arith.addf %199, %202 : vector<8x8xf32>
    %c2_195 = arith.constant 2 : index
    %c1_196 = arith.constant 1 : index
    %c0_197 = arith.constant 0 : index
    %c0_198 = arith.constant 0 : index
    %204 = vector.load %arg2[%c2_195, %c1_196, %c0_197, %c0_198] : memref<3x4x32x8xf32, #tpu.memory_space<vmem>>, vector<1x1x32x8xf32>
    %205 = vector.shape_cast %204 : vector<1x1x32x8xf32> to vector<32x8xf32>
    %cst_199 = arith.constant dense<0.000000e+00> : vector<8x8xf32>
    %206 = tpu.matmul %152, %205, %cst_199 {dimension_numbers = #tpu.dot_dimension_numbers<[1], [0], [0], [1], [0, 0, 1, 1], [], []>} : vector<8x32xf32>, vector<32x8xf32>, vector<8x8xf32> -> vector<8x8xf32>
    %c2_200 = arith.constant 2 : index
    %c1_201 = arith.constant 1 : index
    %c0_202 = arith.constant 0 : index
    %c0_203 = arith.constant 0 : index
    %207 = vector.load %arg3[%c2_200, %c1_201, %c0_202, %c0_203] : memref<3x4x1x8xf32, #tpu.memory_space<vmem>>, vector<1x1x1x8xf32>
    %208 = vector.shape_cast %207 : vector<1x1x1x8xf32> to vector<1x8xf32>
    %209 = vector.broadcast %208 : vector<1x8xf32> to vector<8x8xf32>
    %210 = arith.addf %206, %209 : vector<8x8xf32>
    %cst_204 = arith.constant dense<0.000000e+00> : vector<8x8xf32>
    %211 = tpu.matmul %196, %203, %cst_204 {dimension_numbers = #tpu.dot_dimension_numbers<[1], [1], [0], [0], [0, 0, 1, 0], [], []>} : vector<8x8xf32>, vector<8x8xf32>, vector<8x8xf32> -> vector<8x8xf32>
    %cst_205 = arith.constant dense<0xFF800000> : vector<8xf32>
    %212 = vector.multi_reduction <maximumf>, %211, %cst_205 [1] : vector<8x8xf32> to vector<8xf32>
    %213 = vector.shape_cast %212 : vector<8xf32> to vector<8x1xf32>
    %214 = vector.broadcast %213 : vector<8x1xf32> to vector<8x8xf32>
    %215 = arith.subf %211, %214 : vector<8x8xf32>
    %216 = math.exp %215 : vector<8x8xf32>
    %cst_206 = arith.constant dense<0.000000e+00> : vector<8xf32>
    %217 = vector.multi_reduction <add>, %216, %cst_206 [1] : vector<8x8xf32> to vector<8xf32>
    %218 = vector.shape_cast %217 : vector<8xf32> to vector<8x1xf32>
    %219 = vector.broadcast %218 : vector<8x1xf32> to vector<8x8xf32>
    %220 = arith.divf %216, %219 : vector<8x8xf32>
    %cst_207 = arith.constant dense<0.000000e+00> : vector<8x8xf32>
    %221 = tpu.matmul %220, %210, %cst_207 {dimension_numbers = #tpu.dot_dimension_numbers<[1], [0], [0], [1], [0, 0, 1, 1], [], []>} : vector<8x8xf32>, vector<8x8xf32>, vector<8x8xf32> -> vector<8x8xf32>
    %c1_208 = arith.constant 1 : index
    %c0_209 = arith.constant 0 : index
    %c0_210 = arith.constant 0 : index
    %222 = vector.load %arg4[%c1_208, %c0_209, %c0_210] : memref<4x8x32xf32, #tpu.memory_space<vmem>>, vector<1x8x32xf32>
    %223 = vector.shape_cast %222 : vector<1x8x32xf32> to vector<8x32xf32>
    %cst_211 = arith.constant dense<0.000000e+00> : vector<8x32xf32>
    %224 = tpu.matmul %221, %223, %cst_211 {dimension_numbers = #tpu.dot_dimension_numbers<[1], [0], [0], [1], [0, 0, 1, 1], [], []>} : vector<8x8xf32>, vector<8x32xf32>, vector<8x32xf32> -> vector<8x32xf32>
    %225 = arith.addf %189, %224 : vector<8x32xf32>
    %c0_212 = arith.constant 0 : index
    %c2_213 = arith.constant 2 : index
    %c0_214 = arith.constant 0 : index
    %c0_215 = arith.constant 0 : index
    %226 = vector.load %arg2[%c0_212, %c2_213, %c0_214, %c0_215] : memref<3x4x32x8xf32, #tpu.memory_space<vmem>>, vector<1x1x32x8xf32>
    %227 = vector.shape_cast %226 : vector<1x1x32x8xf32> to vector<32x8xf32>
    %cst_216 = arith.constant dense<0.000000e+00> : vector<8x8xf32>
    %228 = tpu.matmul %152, %227, %cst_216 {dimension_numbers = #tpu.dot_dimension_numbers<[1], [0], [0], [1], [0, 0, 1, 1], [], []>} : vector<8x32xf32>, vector<32x8xf32>, vector<8x8xf32> -> vector<8x8xf32>
    %c0_217 = arith.constant 0 : index
    %c2_218 = arith.constant 2 : index
    %c0_219 = arith.constant 0 : index
    %c0_220 = arith.constant 0 : index
    %229 = vector.load %arg3[%c0_217, %c2_218, %c0_219, %c0_220] : memref<3x4x1x8xf32, #tpu.memory_space<vmem>>, vector<1x1x1x8xf32>
    %230 = vector.shape_cast %229 : vector<1x1x1x8xf32> to vector<1x8xf32>
    %231 = vector.broadcast %230 : vector<1x8xf32> to vector<8x8xf32>
    %232 = arith.addf %228, %231 : vector<8x8xf32>
    %c1_221 = arith.constant 1 : index
    %c2_222 = arith.constant 2 : index
    %c0_223 = arith.constant 0 : index
    %c0_224 = arith.constant 0 : index
    %233 = vector.load %arg2[%c1_221, %c2_222, %c0_223, %c0_224] : memref<3x4x32x8xf32, #tpu.memory_space<vmem>>, vector<1x1x32x8xf32>
    %234 = vector.shape_cast %233 : vector<1x1x32x8xf32> to vector<32x8xf32>
    %cst_225 = arith.constant dense<0.000000e+00> : vector<8x8xf32>
    %235 = tpu.matmul %152, %234, %cst_225 {dimension_numbers = #tpu.dot_dimension_numbers<[1], [0], [0], [1], [0, 0, 1, 1], [], []>} : vector<8x32xf32>, vector<32x8xf32>, vector<8x8xf32> -> vector<8x8xf32>
    %c1_226 = arith.constant 1 : index
    %c2_227 = arith.constant 2 : index
    %c0_228 = arith.constant 0 : index
    %c0_229 = arith.constant 0 : index
    %236 = vector.load %arg3[%c1_226, %c2_227, %c0_228, %c0_229] : memref<3x4x1x8xf32, #tpu.memory_space<vmem>>, vector<1x1x1x8xf32>
    %237 = vector.shape_cast %236 : vector<1x1x1x8xf32> to vector<1x8xf32>
    %238 = vector.broadcast %237 : vector<1x8xf32> to vector<8x8xf32>
    %239 = arith.addf %235, %238 : vector<8x8xf32>
    %c2_230 = arith.constant 2 : index
    %c2_231 = arith.constant 2 : index
    %c0_232 = arith.constant 0 : index
    %c0_233 = arith.constant 0 : index
    %240 = vector.load %arg2[%c2_230, %c2_231, %c0_232, %c0_233] : memref<3x4x32x8xf32, #tpu.memory_space<vmem>>, vector<1x1x32x8xf32>
    %241 = vector.shape_cast %240 : vector<1x1x32x8xf32> to vector<32x8xf32>
    %cst_234 = arith.constant dense<0.000000e+00> : vector<8x8xf32>
    %242 = tpu.matmul %152, %241, %cst_234 {dimension_numbers = #tpu.dot_dimension_numbers<[1], [0], [0], [1], [0, 0, 1, 1], [], []>} : vector<8x32xf32>, vector<32x8xf32>, vector<8x8xf32> -> vector<8x8xf32>
    %c2_235 = arith.constant 2 : index
    %c2_236 = arith.constant 2 : index
    %c0_237 = arith.constant 0 : index
    %c0_238 = arith.constant 0 : index
    %243 = vector.load %arg3[%c2_235, %c2_236, %c0_237, %c0_238] : memref<3x4x1x8xf32, #tpu.memory_space<vmem>>, vector<1x1x1x8xf32>
    %244 = vector.shape_cast %243 : vector<1x1x1x8xf32> to vector<1x8xf32>
    %245 = vector.broadcast %244 : vector<1x8xf32> to vector<8x8xf32>
    %246 = arith.addf %242, %245 : vector<8x8xf32>
    %cst_239 = arith.constant dense<0.000000e+00> : vector<8x8xf32>
    %247 = tpu.matmul %232, %239, %cst_239 {dimension_numbers = #tpu.dot_dimension_numbers<[1], [1], [0], [0], [0, 0, 1, 0], [], []>} : vector<8x8xf32>, vector<8x8xf32>, vector<8x8xf32> -> vector<8x8xf32>
    %cst_240 = arith.constant dense<0xFF800000> : vector<8xf32>
    %248 = vector.multi_reduction <maximumf>, %247, %cst_240 [1] : vector<8x8xf32> to vector<8xf32>
    %249 = vector.shape_cast %248 : vector<8xf32> to vector<8x1xf32>
    %250 = vector.broadcast %249 : vector<8x1xf32> to vector<8x8xf32>
    %251 = arith.subf %247, %250 : vector<8x8xf32>
    %252 = math.exp %251 : vector<8x8xf32>
    %cst_241 = arith.constant dense<0.000000e+00> : vector<8xf32>
    %253 = vector.multi_reduction <add>, %252, %cst_241 [1] : vector<8x8xf32> to vector<8xf32>
    %254 = vector.shape_cast %253 : vector<8xf32> to vector<8x1xf32>
    %255 = vector.broadcast %254 : vector<8x1xf32> to vector<8x8xf32>
    %256 = arith.divf %252, %255 : vector<8x8xf32>
    %cst_242 = arith.constant dense<0.000000e+00> : vector<8x8xf32>
    %257 = tpu.matmul %256, %246, %cst_242 {dimension_numbers = #tpu.dot_dimension_numbers<[1], [0], [0], [1], [0, 0, 1, 1], [], []>} : vector<8x8xf32>, vector<8x8xf32>, vector<8x8xf32> -> vector<8x8xf32>
    %c2_243 = arith.constant 2 : index
    %c0_244 = arith.constant 0 : index
    %c0_245 = arith.constant 0 : index
    %258 = vector.load %arg4[%c2_243, %c0_244, %c0_245] : memref<4x8x32xf32, #tpu.memory_space<vmem>>, vector<1x8x32xf32>
    %259 = vector.shape_cast %258 : vector<1x8x32xf32> to vector<8x32xf32>
    %cst_246 = arith.constant dense<0.000000e+00> : vector<8x32xf32>
    %260 = tpu.matmul %257, %259, %cst_246 {dimension_numbers = #tpu.dot_dimension_numbers<[1], [0], [0], [1], [0, 0, 1, 1], [], []>} : vector<8x8xf32>, vector<8x32xf32>, vector<8x32xf32> -> vector<8x32xf32>
    %261 = arith.addf %225, %260 : vector<8x32xf32>
    %c0_247 = arith.constant 0 : index
    %c3_248 = arith.constant 3 : index
    %c0_249 = arith.constant 0 : index
    %c0_250 = arith.constant 0 : index
    %262 = vector.load %arg2[%c0_247, %c3_248, %c0_249, %c0_250] : memref<3x4x32x8xf32, #tpu.memory_space<vmem>>, vector<1x1x32x8xf32>
    %263 = vector.shape_cast %262 : vector<1x1x32x8xf32> to vector<32x8xf32>
    %cst_251 = arith.constant dense<0.000000e+00> : vector<8x8xf32>
    %264 = tpu.matmul %152, %263, %cst_251 {dimension_numbers = #tpu.dot_dimension_numbers<[1], [0], [0], [1], [0, 0, 1, 1], [], []>} : vector<8x32xf32>, vector<32x8xf32>, vector<8x8xf32> -> vector<8x8xf32>
    %c0_252 = arith.constant 0 : index
    %c3_253 = arith.constant 3 : index
    %c0_254 = arith.constant 0 : index
    %c0_255 = arith.constant 0 : index
    %265 = vector.load %arg3[%c0_252, %c3_253, %c0_254, %c0_255] : memref<3x4x1x8xf32, #tpu.memory_space<vmem>>, vector<1x1x1x8xf32>
    %266 = vector.shape_cast %265 : vector<1x1x1x8xf32> to vector<1x8xf32>
    %267 = vector.broadcast %266 : vector<1x8xf32> to vector<8x8xf32>
    %268 = arith.addf %264, %267 : vector<8x8xf32>
    %c1_256 = arith.constant 1 : index
    %c3_257 = arith.constant 3 : index
    %c0_258 = arith.constant 0 : index
    %c0_259 = arith.constant 0 : index
    %269 = vector.load %arg2[%c1_256, %c3_257, %c0_258, %c0_259] : memref<3x4x32x8xf32, #tpu.memory_space<vmem>>, vector<1x1x32x8xf32>
    %270 = vector.shape_cast %269 : vector<1x1x32x8xf32> to vector<32x8xf32>
    %cst_260 = arith.constant dense<0.000000e+00> : vector<8x8xf32>
    %271 = tpu.matmul %152, %270, %cst_260 {dimension_numbers = #tpu.dot_dimension_numbers<[1], [0], [0], [1], [0, 0, 1, 1], [], []>} : vector<8x32xf32>, vector<32x8xf32>, vector<8x8xf32> -> vector<8x8xf32>
    %c1_261 = arith.constant 1 : index
    %c3_262 = arith.constant 3 : index
    %c0_263 = arith.constant 0 : index
    %c0_264 = arith.constant 0 : index
    %272 = vector.load %arg3[%c1_261, %c3_262, %c0_263, %c0_264] : memref<3x4x1x8xf32, #tpu.memory_space<vmem>>, vector<1x1x1x8xf32>
    %273 = vector.shape_cast %272 : vector<1x1x1x8xf32> to vector<1x8xf32>
    %274 = vector.broadcast %273 : vector<1x8xf32> to vector<8x8xf32>
    %275 = arith.addf %271, %274 : vector<8x8xf32>
    %c2_265 = arith.constant 2 : index
    %c3_266 = arith.constant 3 : index
    %c0_267 = arith.constant 0 : index
    %c0_268 = arith.constant 0 : index
    %276 = vector.load %arg2[%c2_265, %c3_266, %c0_267, %c0_268] : memref<3x4x32x8xf32, #tpu.memory_space<vmem>>, vector<1x1x32x8xf32>
    %277 = vector.shape_cast %276 : vector<1x1x32x8xf32> to vector<32x8xf32>
    %cst_269 = arith.constant dense<0.000000e+00> : vector<8x8xf32>
    %278 = tpu.matmul %152, %277, %cst_269 {dimension_numbers = #tpu.dot_dimension_numbers<[1], [0], [0], [1], [0, 0, 1, 1], [], []>} : vector<8x32xf32>, vector<32x8xf32>, vector<8x8xf32> -> vector<8x8xf32>
    %c2_270 = arith.constant 2 : index
    %c3_271 = arith.constant 3 : index
    %c0_272 = arith.constant 0 : index
    %c0_273 = arith.constant 0 : index
    %279 = vector.load %arg3[%c2_270, %c3_271, %c0_272, %c0_273] : memref<3x4x1x8xf32, #tpu.memory_space<vmem>>, vector<1x1x1x8xf32>
    %280 = vector.shape_cast %279 : vector<1x1x1x8xf32> to vector<1x8xf32>
    %281 = vector.broadcast %280 : vector<1x8xf32> to vector<8x8xf32>
    %282 = arith.addf %278, %281 : vector<8x8xf32>
    %cst_274 = arith.constant dense<0.000000e+00> : vector<8x8xf32>
    %283 = tpu.matmul %268, %275, %cst_274 {dimension_numbers = #tpu.dot_dimension_numbers<[1], [1], [0], [0], [0, 0, 1, 0], [], []>} : vector<8x8xf32>, vector<8x8xf32>, vector<8x8xf32> -> vector<8x8xf32>
    %cst_275 = arith.constant dense<0xFF800000> : vector<8xf32>
    %284 = vector.multi_reduction <maximumf>, %283, %cst_275 [1] : vector<8x8xf32> to vector<8xf32>
    %285 = vector.shape_cast %284 : vector<8xf32> to vector<8x1xf32>
    %286 = vector.broadcast %285 : vector<8x1xf32> to vector<8x8xf32>
    %287 = arith.subf %283, %286 : vector<8x8xf32>
    %288 = math.exp %287 : vector<8x8xf32>
    %cst_276 = arith.constant dense<0.000000e+00> : vector<8xf32>
    %289 = vector.multi_reduction <add>, %288, %cst_276 [1] : vector<8x8xf32> to vector<8xf32>
    %290 = vector.shape_cast %289 : vector<8xf32> to vector<8x1xf32>
    %291 = vector.broadcast %290 : vector<8x1xf32> to vector<8x8xf32>
    %292 = arith.divf %288, %291 : vector<8x8xf32>
    %cst_277 = arith.constant dense<0.000000e+00> : vector<8x8xf32>
    %293 = tpu.matmul %292, %282, %cst_277 {dimension_numbers = #tpu.dot_dimension_numbers<[1], [0], [0], [1], [0, 0, 1, 1], [], []>} : vector<8x8xf32>, vector<8x8xf32>, vector<8x8xf32> -> vector<8x8xf32>
    %c3_278 = arith.constant 3 : index
    %c0_279 = arith.constant 0 : index
    %c0_280 = arith.constant 0 : index
    %294 = vector.load %arg4[%c3_278, %c0_279, %c0_280] : memref<4x8x32xf32, #tpu.memory_space<vmem>>, vector<1x8x32xf32>
    %295 = vector.shape_cast %294 : vector<1x8x32xf32> to vector<8x32xf32>
    %cst_281 = arith.constant dense<0.000000e+00> : vector<8x32xf32>
    %296 = tpu.matmul %293, %295, %cst_281 {dimension_numbers = #tpu.dot_dimension_numbers<[1], [0], [0], [1], [0, 0, 1, 1], [], []>} : vector<8x8xf32>, vector<8x32xf32>, vector<8x32xf32> -> vector<8x32xf32>
    %297 = arith.addf %261, %296 : vector<8x32xf32>
    %298 = vector.broadcast %1 : vector<1x32xf32> to vector<8x32xf32>
    %299 = arith.addf %297, %298 : vector<8x32xf32>
    %300 = vector.shape_cast %150 : vector<8x32xf32> to vector<8x1x32xf32>
    %301 = vector.shape_cast %299 : vector<8x32xf32> to vector<8x1x32xf32>
    %302 = tpu.concatenate %300, %301 in 1 : vector<8x1x32xf32>, vector<8x1x32xf32> -> vector<8x2x32xf32>
    %c0_282 = arith.constant 0 : index
    %c0_283 = arith.constant 0 : index
    %c0_284 = arith.constant 0 : index
    %303 = vector.load %arg6[%c0_282, %c0_283, %c0_284] : memref<8x2x32xf32, #tpu.memory_space<vmem>>, vector<8x2x32xf32>
    tpu.vector_store %arg6[%c0_282, %c0_283, %c0_284], %302 {strides = array<i32>} : memref<8x2x32xf32, #tpu.memory_space<vmem>>, vector<8x2x32xf32>,
    return
  }
  func.func @transform_0(%arg0: i32) -> (i32, i32, i32) {
    %c0_i32 = arith.constant 0 : i32
    %c0_i32_0 = arith.constant 0 : i32
    %c0_i32_1 = arith.constant 0 : i32
    %c0_i32_2 = arith.constant 0 : i32
    return %c0_i32, %c0_i32_0, %c0_i32_1 : i32, i32, i32
  }
  func.func @transform_1(%arg0: i32) -> (i32, i32, i32, i32) {
    %c0_i32 = arith.constant 0 : i32
    %c0_i32_0 = arith.constant 0 : i32
    %c0_i32_1 = arith.constant 0 : i32
    %c0_i32_2 = arith.constant 0 : i32
    %c0_i32_3 = arith.constant 0 : i32
    return %c0_i32, %c0_i32_0, %c0_i32_1, %c0_i32_2 : i32, i32, i32, i32
  }
  func.func @transform_2(%arg0: i32) -> (i32, i32, i32, i32) {
    %c0_i32 = arith.constant 0 : i32
    %c0_i32_0 = arith.constant 0 : i32
    %c0_i32_1 = arith.constant 0 : i32
    %c0_i32_2 = arith.constant 0 : i32
    %c0_i32_3 = arith.constant 0 : i32
    return %c0_i32, %c0_i32_0, %c0_i32_1, %c0_i32_2 : i32, i32, i32, i32
  }
  func.func @transform_3(%arg0: i32) -> (i32, i32, i32) {
    %c0_i32 = arith.constant 0 : i32
    %c0_i32_0 = arith.constant 0 : i32
    %c0_i32_1 = arith.constant 0 : i32
    %c0_i32_2 = arith.constant 0 : i32
    return %c0_i32, %c0_i32_0, %c0_i32_1 : i32, i32, i32
  }
  func.func @transform_4(%arg0: i32) -> (i32, i32) {
    %c0_i32 = arith.constant 0 : i32
    %c0_i32_0 = arith.constant 0 : i32
    %c0_i32_1 = arith.constant 0 : i32
    return %c0_i32, %c0_i32_0 : i32, i32
  }
  func.func @transform_5(%arg0: i32) -> (i32, i32, i32) {
    %c0_i32 = arith.constant 0 : i32
    %c0_i32_0 = arith.constant 0 : i32
    %c0_i32_1 = arith.constant 0 : i32
    %c0_i32_2 = arith.constant 0 : i32
    return %c0_i32, %c0_i32_0, %c0_i32_1 : i32, i32, i32
  }
}

</mosaic_0001>

<bundles_post_ra>
// kernel: tpu_custom_call.1
= control target key start
LH: loop header
LB: loop body
LE: loop exit
PB: predicated region body
PF: predicated region fallthrough
CT: control target
= control target key end

     0   :  { %vm47_vm0 = vcmask 1041409   ;;  %vm50_vm1 = vcmask 1042434   ;;  %vm53_vm2 = vcmask 1043459   ;;  %vm56_vm3 = vcmask 1044484   ;;  %s2406_s0 = inlined_call_operand.vmem [shape: f32[8,2,32], index: 0, kind: input, shape index: {}]   ;;  %s2407_s1 = inlined_call_operand.vmem [shape: f32[3,4,32,8], index: 1, kind: input, shape index: {}]   ;;  %s2408_s2 = inlined_call_operand.vmem [shape: f32[3,4,1,8], index: 2, kind: input, shape index: {}]   ;;  %s2409_s3 = inlined_call_operand.vmem [shape: f32[4,8,32], index: 3, kind: input, shape index: {}]   ;;  %s2410_s4 = inlined_call_operand.vmem [shape: f32[1,32], index: 4, kind: input, shape index: {}]   ;;  %s2411_s5 = inlined_call_operand.hbm [shape: f32[8,2,32], index: 5, kind: output, shape index: {}]  }
   0x1   :  { %v1760_v0 = vld [vmem:[%s2407_s1 + $0x98] sm:$0xff]  ;;  %v1765_v1 = vld [vmem:[%s2407_s1 + $0x90] sm:$0xff]  ;;  %v1777_v3 = vld [vmem:[%s2407_s1 + $0x88] sm:$0xff]  ;;  %vm59_vm4 = vcmask 1045509   ;;  %vm62_vm5 = vcmask 1046534   ;;  %vm65_vm6 = vcmask 1047559  }
   0x2   :  { %v1770_v2 = vld [vmem:[%s2407_s1 + $0x18] sm:$0xff]  ;;  %112 = vmatpush.msra.mxu1 %v1760_v0  ;;  %v1782_v4 = vld [vmem:[%s2407_s1 + $0x10] sm:$0xff]  ;;  %v1787_v5 = vld [vmem:[%s2407_s1 + $0x80] sm:$0xff]  ;;  %vm67_vm7 = vcmask 261120  }
   0x3   :  { %82 = vmatpush.msra.mxu0 %v1770_v2  ;;  %v1792_v6 = vld [vmem:[%s2407_s1 + $0x8] sm:$0xff]  ;;  %v1797_v7 = vld [vmem:[%s2406_s0] sm:$0x3]  ;;  %v1802_v8 = vld [vmem:[%s2406_s0 + $0x2] sm:$0x3] }
   0x4   :  { %113 = vmatpush.msra.mxu1 %v1765_v1  ;;  %v1809_v9 = vld [vmem:[%s2406_s0 + $0x4] sm:$0x3]  ;;  %v1814_v10 = vld [vmem:[%s2406_s0 + $0x6] sm:$0x3]  ;;  %v1819_v11 = vld [vmem:[%s2406_s0 + $0x8] sm:$0x3] }
   0x5   :  { %83 = vmatpush.msra.mxu0 %v1782_v4  ;;  %v1824_v12 = vld [vmem:[%s2406_s0 + $0xa] sm:$0x3]  ;;  %v1829_v13 = vld [vmem:[%s2406_s0 + $0xc] sm:$0x3]  ;;  %v1834_v14 = vld [vmem:[%s2406_s0 + $0xe] sm:$0x3] }
   0x6   :  { %114 = vmatpush.msra.mxu1 %v1777_v3  ;;  %v46_v15 = vrot.slane %v1802_v8, 7  ;;  %v49_v16 = vrot.slane %v1809_v9, 6  ;;  %v52_v17 = vrot.slane %v1814_v10, 5  ;;  %v1844_v18 = vld [vmem:[%s2407_s1] sm:$0xff]  ;;  %v55_v19 = vrot.slane %v1819_v11, 4 }
   0x7   :  { %84 = vmatpush.msra.mxu0 %v1792_v6  ;;  %v58_v20 = vrot.slane %v1824_v12, 3  ;;  %v61_v22 = vrot.slane %v1829_v13, 2  ;;  %v64_v23 = vrot.slane %v1834_v14, 1 }
   0x8   :  { %115 = vmatpush.msra.mxu1 %v1787_v5  ;;  %v48_v21 = vsel %vm47_vm0, %v46_v15, %v1797_v7 }
   0x9   :  { %85 = vmatpush.msra.mxu0 %v1844_v18  ;;  %v51_v24 = vsel %vm50_vm1, %v49_v16, %v48_v21 }
   0xa   :  { %v54_v25 = vsel %vm53_vm2, %v52_v17, %v51_v24 }
   0xb   :  { %v57_v26 = vsel %vm56_vm3, %v55_v19, %v54_v25 }
   0xc   :  { %v60_v27 = vsel %vm59_vm4, %v58_v20, %v57_v26 }
   0xd   :  { %10 = vsyncpa [#allocation3], 0  ;;  %v63_v28 = vsel %vm62_vm5, %v61_v22, %v60_v27  ;;  %v1869_v30 = vld [vmem:[%s2408_s2 + $0x4] ss:$0 sm:$0xff]  ;;  %v1874_v31 = vld [vmem:[%s2408_s2] ss:$0 sm:$0xff] }
   0xe   :  { %v1860_v29 = vsel %vm65_vm6, %v64_v23, %v63_v28  ;;  %vm150_vm8 = vcmask 64512   ;;  %v1884_v38 = vld [vmem:[%s2407_s1 + $0x118] sm:$0xff]  ;;  %v1889_v39 = vld [vmem:[%s2407_s1 + $0x110] sm:$0xff]  ;;  %v1895_v40 = vld [vmem:[%s2407_s1 + $0x108] sm:$0xff]  ;;  %s1524_s9 = sshll.u32 %s2411_s5, 4  ;;  %s1725_s10 = smov 32   ;;  %s1525_s9 = int_to_ptr.hbm [resolvable:$true] %s1524_s9 }
   0xf   :  { %1542 = vmatmul.msk.f32.vlgmr.msra.gmra.mxu1 %vm67_vm7, %v1860_v29  ;;  %1536 = vmatmul.msk.f32.vlgmr.msra.gmra.mxu0 %vm67_vm7, %v1860_v29  ;;  %v1901_v41 = vld [vmem:[%s2407_s1 + $0x100] sm:$0xff]  ;;  %v1910_v42 = vld [vmem:[%s2407_s1 + $0xb8] sm:$0xff]  ;;  %v1915_v43 = vld [vmem:[%s2407_s1 + $0xb0] sm:$0xff]  ;;  %s1726_s11 = smov 2  }
  0x10   :  { %142 = vmatpush.msra.mxu2 %v1884_v38  ;;  %v1920_v44 = vld [vmem:[%s2407_s1 + $0x38] sm:$0xff]  ;;  %277 = vmatpush.msrb.mxu1 %v1910_v42  ;;  %v1927_v45 = vld [vmem:[%s2407_s1 + $0x30] sm:$0xff]  ;;  %v1932_v46 = vld [vmem:[%s2407_s1 + $0xa8] sm:$0xff] }
  0x11   :  { %247 = vmatpush.msrb.mxu0 %v1920_v44  ;;  %v1937_v47 = vld [vmem:[%s2407_s1 + $0x28] sm:$0xff]  ;;  %v1944_v48 = vld [vmem:[%s2407_s1 + $0xa0] sm:$0xff]  ;;  %v1976_v61 = vld [vmem:[%s2407_s1 + $0x138] sm:$0xff] }
  0x12   :  { %143 = vmatpush.msra.mxu2 %v1889_v39  ;;  %278 = vmatpush.msrb.mxu1 %v1915_v43  ;;  %v1949_v49 = vld [vmem:[%s2407_s1 + $0x20] sm:$0xff]  ;;  %v1963_v55 = vld [vmem:[%s2408_s2 + $0x8] ss:$0 sm:$0xff]  ;;  %v1981_v62 = vld [vmem:[%s2407_s1 + $0x130] sm:$0xff] }
  0x13   :  { %248 = vmatpush.msrb.mxu0 %v1927_v45  ;;  %v1969_v58 = vld [vmem:[%s2408_s2 + $0x5] ss:$0 sm:$0xff]  ;;  %v1987_v63 = vld [vmem:[%s2407_s1 + $0x128] sm:$0xff] }
  0x14   :  { %144 = vmatpush.msra.mxu2 %v1895_v40  ;;  %279 = vmatpush.msrb.mxu1 %v1932_v46  ;;  %v1993_v16 = vld [vmem:[%s2407_s1 + $0x120] sm:$0xff] }
  0x15   :  { %249 = vmatpush.msrb.mxu0 %v1937_v47 }
  0x16   :  { %145 = vmatpush.msra.mxu2 %v1901_v41  ;;  %280 = vmatpush.msrb.mxu1 %v1944_v48 }
  0x17   :  { %1548 = vmatmul.msk.f32.vlgmr.msra.gmra.mxu2 %vm67_vm7, %v1860_v29  ;;  %250 = vmatpush.msrb.mxu0 %v1949_v49 }
  0x18   :  { %1563 = vmatmul.msk.f32.vlgmr.msrb.gmra.mxu1 %vm67_vm7, %v1860_v29  ;;  %1557 = vmatmul.msk.f32.vlgmr.msrb.gmra.mxu0 %vm67_vm7, %v1860_v29 }
  0x19   :  { %307 = vmatpush.msrb.mxu2 %v1976_v61 }
  0x1b   :  { %308 = vmatpush.msrb.mxu2 %v1981_v62 }
  0x1d   :  { %309 = vmatpush.msrb.mxu2 %v1987_v63 }
  0x1f   :  { %310 = vmatpush.msrb.mxu2 %v1993_v16 }
  0x20   :  { %1569 = vmatmul.msk.f32.vlgmr.msrb.gmra.mxu2 %vm67_vm7, %v1860_v29 }
  0x8c   :  { %v117_v32 = vpop.f32.mrf.mxu1  ;;  %v87_v33 = vpop.f32.mrf.mxu0 }
  0x8d   :  { %v118_v34 = vadd.f32 %v1869_v30, %v117_v32  ;;  %v88_v35 = vadd.f32 %v1874_v31, %v87_v33  ;;  %v2003_v32 = vld [vmem:[%s2408_s2 + $0x1] ss:$0 sm:$0xff] }
  0x8f   :  { %1549 = vmatpush.xpose.msk.msra.mxu3 %vm150_vm8, %v118_v34 }
  0x92   :  { %1550 = vmatmul.msk.f32.vlgmr.msra.gmra.mxu3 %vm150_vm8, %v88_v35  ;;  %v2010_v35 = vld [vmem:[%s2409_s3] sm:$0xff] }
  0x93   :  { %431 = vmatpush.msra.mxu2 %v2010_v35 }
  0x95   :  { %v282_v59 = vpop.f32.mrf.mxu1  ;;  %v252_v33 = vpop.f32.mrf.mxu0 }
  0x96   :  { %v283_v60 = vadd.f32 %v1969_v58, %v282_v59  ;;  %v253_v34 = vadd.f32 %v2003_v32, %v252_v33 }
  0x9a   :  { %v147_v56 = vpop.f32.mrf.mxu2 }
  0x9b   :  { %v148_v57 = vadd.f32 %v1963_v55, %v147_v56 }
  0x9d   :  { %219 = vmatpush.msrb.mxu3 %v148_v57 }
  0x9f   :  { %1570 = vmatpush.xpose.msk.msra.mxu3 %vm150_vm8, %v283_v60 }
 0x115   :  { %v174_v36 = vpop.f32.mrf.mxu3 }
 0x116   :  { %v177_v37 = vsel %vm150_vm8, %v174_v36, -inf }
 0x117   :  { %178 = vmax.xlane.f32.xlu0 %v177_v37  ;;  %v312_v37 = vpop.f32.mrf.mxu2 }
 0x18a   :  { %v179_v50 = vpop.xlane.xlu0 %178 }
 0x18b   :  { %v180_v51 = vsub.f32 %v174_v36, %v179_v50  ;;  %v2016_v36 = vld [vmem:[%s2408_s2 + $0x9] ss:$0 sm:$0xff] }
 0x18c   :  { %2429 = vst [vmem:[#allocation5_spill] sm:$0xff] %v2016_v36  ;;  %v313_v50 = vadd.f32 %v2016_v36, %v312_v37  ;;  %v2194_v36 = vld [vmem:[%s2408_s2 + $0x7] ss:$0 sm:$0xff] }
 0x18d   :  { %v181_v52 = vmul.f32 1.442695, %v180_v51 }
 0x18e   :  { %383 = vmatpush.msra.mxu0 %v313_v50 }
 0x18f   :  { %1666 = vpow2.f32 %v181_v52 }
 0x195   :  { %v1667_v53 = vpop.eup %1666 }
 0x196   :  { %v183_v54 = vsel %vm150_vm8, %v1667_v53, 0.0 }
 0x197   :  { %184 = vadd.xlane.f32.xlu0 %v183_v54 }
 0x20a   :  { %v185_v15 = vpop.xlane.xlu0 %184 }
 0x20b   :  { %1668 = vrcp.f32 %v185_v15  ;;  %v197_v21 = vand.u32 2147483648, %v185_v15  ;;  %v195_v23 = vand.u32 2147483647, %v185_v15  ;;  %vm191_vm10 = vweird.f32 %v185_v15 }
 0x20d   :  { %v198_v25 = vor.u32 1.1754944e-38, %v197_v21  ;;  %vm196_vm12 = vcmp.eq.f32.partialorder %v195_v23, 8.507059e+37  ;;  %v2047_v21 = vld [vmem:[%s2407_s1 + $0xd0] sm:$0xff]  ;;  %v2059_v23 = vld [vmem:[%s2407_s1 + $0xc8] sm:$0xff] }
 0x20e   :  { %2431 = vst [vmem:[#allocation7_spill] sm:$0xff] %v2047_v21 }
 0x20f   :  { %2432 = vst [vmem:[#allocation8_spill] sm:$0xff] %v2059_v23 }
 0x211   :  { %v1669_v17 = vpop.eup %1668 }
 0x212   :  { %v187_v19 = vmul.f32 %v1669_v17, %v185_v15  ;;  %vm192_vm9 = vweird.f32 %v1669_v17  ;;  %v2025_v15 = vld [vmem:[%s2407_s1 + $0x58] sm:$0xff] }
 0x213   :  { %vm193_vm11 = vmor %vm191_vm10, %vm192_vm9 }
 0x214   :  { %v188_v20 = vsub.f32 1.0, %v187_v19  ;;  %v2037_v19 = vld [vmem:[%s2407_s1 + $0xd8] sm:$0xff] }
 0x215   :  { %2430 = vst [vmem:[#allocation6_spill] sm:$0xff] %v2037_v19  ;;  %488 = vmatpush.msrb.mxu0 %v2037_v19 }
 0x216   :  { %v189_v22 = vmul.f32 %v1669_v17, %v188_v20  ;;  %v2042_v20 = vld [vmem:[%s2407_s1 + $0x48] sm:$0xff] }
 0x217   :  { %489 = vmatpush.msrb.mxu0 %v2047_v21 }
 0x218   :  { %v190_v24 = vadd.f32 %v1669_v17, %v189_v22  ;;  %v2053_v22 = vld [vmem:[%s2407_s1 + $0x40] sm:$0xff] }
 0x219   :  { %490 = vmatpush.msrb.mxu0 %v2059_v23 }
 0x21a   :  { %v194_v26 = vsel %vm193_vm11, %v1669_v17, %v190_v24  ;;  %v2031_v17 = vld [vmem:[%s2407_s1 + $0x50] sm:$0xff]  ;;  %v2066_v24 = vld [vmem:[%s2407_s1 + $0xc0] sm:$0xff] }
 0x21b   :  { %v199_v27 = vsel %vm196_vm12, %v198_v25, %v194_v26  ;;  %2433 = vst [vmem:[#allocation9_spill] sm:$0xff] %v2066_v24  ;;  %491 = vmatpush.msrb.mxu0 %v2066_v24 }
 0x21c   :  { %v200_v28 = vmul.f32 %v1667_v53, %v199_v27 }
 0x21e   :  { %1551 = vmatmul.msk.f32.vlgmr.msrb.gmra.mxu3 %vm150_vm8, %v200_v28 }
 0x21f   :  { %458 = vmatpush.msrb.mxu3 %v2025_v15 }
 0x221   :  { %459 = vmatpush.msrb.mxu3 %v2031_v17 }
 0x223   :  { %460 = vmatpush.msrb.mxu3 %v2042_v20 }
 0x225   :  { %461 = vmatpush.msrb.mxu3 %v2053_v22 }
 0x226   :  { %1571 = vmatmul.msk.f32.vlgmr.msra.gmra.mxu3 %vm150_vm8, %v253_v34 }
 0x22e   :  { %1581 = vmatmul.msk.f32.vlgmr.msrb.gmra.mxu3 %vm67_vm7, %v1860_v29 }
 0x2a1   :  { %v221_v51 = vpop.f32.mrf.mxu3 }
 0x2a2   :  { %1575 = vmatmul.msk.f32.vlgmr.msra.gmra.mxu2 %vm150_vm8, %v221_v51 }
 0x2a9   :  { %v338_v52 = vpop.f32.mrf.mxu3 }
 0x2aa   :  { %v341_v53 = vsel %vm150_vm8, %v338_v52, -inf }
 0x2ab   :  { %342 = vmax.xlane.f32.xlu1 %v341_v53 }
 0x31e   :  { %v343_v54 = vpop.xlane.xlu1 %342 }
 0x31f   :  { %v344_v56 = vsub.f32 %v338_v52, %v343_v54 }
 0x321   :  { %v345_v57 = vmul.f32 1.442695, %v344_v56  ;;  %v2078_v56 = vld [vmem:[%s2409_s3 + $0x8] sm:$0xff] }
 0x322   :  { %408 = vmatpush.msra.mxu1 %v2078_v56 }
 0x323   :  { %1670 = vpow2.f32 %v345_v57 }
 0x329   :  { %v1671_v59 = vpop.eup %1670 }
 0x32a   :  { %v347_v60 = vsel %vm150_vm8, %v1671_v59, 0.0 }
 0x32b   :  { %348 = vadd.xlane.f32.xlu1 %v347_v60  ;;  %v2085_v60 = vld [vmem:[%s2408_s2 + $0x6] ss:$0 sm:$0xff] }
 0x32c   :  { %2434 = vst [vmem:[#allocation10_spill] sm:$0xff] %v2085_v60 }
 0x39e   :  { %v349_v25 = vpop.xlane.xlu1 %348 }
 0x39f   :  { %1672 = vrcp.f32 %v349_v25  ;;  %v361_v33 = vand.u32 2147483648, %v349_v25  ;;  %v359_v37 = vand.u32 2147483647, %v349_v25  ;;  %vm355_vm14 = vweird.f32 %v349_v25 }
 0x3a1   :  { %v362_v51 = vor.u32 1.1754944e-38, %v361_v33  ;;  %vm360_vm9 = vcmp.eq.f32.partialorder %v359_v37, 8.507059e+37  ;;  %v2096_v33 = vpop.f32.mrf.mxu2 }
 0x3a5   :  { %v1673_v26 = vpop.eup %1672 }
 0x3a6   :  { %v351_v27 = vmul.f32 %v1673_v26, %v349_v25  ;;  %vm356_vm13 = vweird.f32 %v1673_v26  ;;  %v463_v25 = vpop.f32.mrf.mxu3 }
 0x3a7   :  { %vm357_vm15 = vmor %vm355_vm14, %vm356_vm13 }
 0x3a8   :  { %v352_v28 = vsub.f32 1.0, %v351_v27 }
 0x3aa   :  { %v353_v34 = vmul.f32 %v1673_v26, %v352_v28 }
 0x3ac   :  { %v354_v50 = vadd.f32 %v1673_v26, %v353_v34 }
 0x3ae   :  { %v358_v52 = vsel %vm357_vm15, %v1673_v26, %v354_v50  ;;  %v2102_v50 = vld [vmem:[%s2407_s1 + $0x158] sm:$0xff] }
 0x3af   :  { %v363_v53 = vsel %vm360_vm9, %v362_v51, %v358_v52  ;;  %v2107_v51 = vld [vmem:[%s2407_s1 + $0x150] sm:$0xff]  ;;  %518 = vmatpush.msrb.mxu1 %v2102_v50  ;;  %v2114_v52 = vld [vmem:[%s2407_s1 + $0x148] sm:$0xff] }
 0x3b0   :  { %v364_v54 = vmul.f32 %v1671_v59, %v363_v53  ;;  %v2090_v59 = vld [vmem:[%s2408_s2 + $0x2] ss:$0 sm:$0xff] }
 0x3b1   :  { %2435 = vst [vmem:[#allocation11_spill] sm:$0xff] %v2090_v59  ;;  %v464_v28 = vadd.f32 %v2090_v59, %v463_v25  ;;  %519 = vmatpush.msrb.mxu1 %v2107_v51  ;;  %v2119_v53 = vld [vmem:[%s2407_s1 + $0x140] sm:$0xff]  ;;  %v2134_v59 = vld [vmem:[%s2407_s1 + $0xf8] sm:$0xff] }
 0x3b2   :  { %1572 = vmatmul.msk.f32.vlgmr.msra.gmra.mxu0 %vm150_vm8, %v364_v54  ;;  %2437 = vst [vmem:[#allocation13_spill] sm:$0xff] %v2134_v59 }
 0x3b3   :  { %520 = vmatpush.msrb.mxu1 %v2114_v52 }
 0x3b5   :  { %521 = vmatpush.msrb.mxu1 %v2119_v53 }
 0x3ba   :  { %1587 = vmatmul.msk.f32.vlgmr.msrb.gmra.mxu0 %vm67_vm7, %v1860_v29 }
 0x42f   :  { %v385_v57 = vpop.f32.mrf.mxu0 }
 0x430   :  { %1574 = vmatmul.msk.f32.vlgmr.msra.gmra.mxu1 %vm150_vm8, %v385_v57 }
 0x437   :  { %v493_v26 = vpop.f32.mrf.mxu0 }
 0x438   :  { %v494_v27 = vadd.f32 %v2085_v60, %v493_v26  ;;  %1593 = vmatmul.msk.f32.vlgmr.msrb.gmra.mxu1 %vm67_vm7, %v1860_v29 }
 0x43a   :  { %1594 = vmatpush.xpose.msk.msrb.mxu2 %vm150_vm8, %v494_v27 }
 0x43d   :  { %1595 = vmatmul.msk.f32.vlgmr.msrb.gmra.mxu2 %vm150_vm8, %v464_v28 }
 0x43e   :  { %677 = vmatpush.msra.mxu2 %v2134_v59 }
 0x4ad   :  { %v410_v28 = vpop.f32.mrf.mxu1 }
 0x4b5   :  { %v523_v60 = vpop.f32.mrf.mxu1 }
 0x4c0   :  { %v549_v34 = vpop.f32.mrf.mxu2 }
 0x4c1   :  { %v552_v37 = vsel %vm150_vm8, %v549_v34, -inf }
 0x4c2   :  { %553 = vmax.xlane.f32.xlu2 %v552_v37  ;;  %v2129_v37 = vld [vmem:[%s2408_s2 + $0xa] ss:$0 sm:$0xff] }
 0x4c3   :  { %2436 = vst [vmem:[#allocation12_spill] sm:$0xff] %v2129_v37 }
 0x535   :  { %v554_v54 = vpop.xlane.xlu2 %553 }
 0x536   :  { %v555_v57 = vsub.f32 %v549_v34, %v554_v54  ;;  %v524_v34 = vadd.f32 %v2129_v37, %v523_v60  ;;  %v2141_v54 = vld [vmem:[%s2407_s1 + $0xf0] sm:$0xff]  ;;  %v2158_v60 = vld [vmem:[%s2407_s1 + $0x78] sm:$0xff]  ;;  %v2175_v37 = vld [vmem:[%s2407_s1 + $0x68] sm:$0xff] }
 0x537   :  { %2438 = vst [vmem:[#allocation14_spill] sm:$0xff] %v2141_v54  ;;  %678 = vmatpush.msra.mxu2 %v2141_v54  ;;  %647 = vmatpush.msra.mxu1 %v2158_v60 }
 0x538   :  { %v556_v25 = vmul.f32 1.442695, %v555_v57  ;;  %594 = vmatpush.msra.mxu3 %v524_v34  ;;  %v2147_v57 = vld [vmem:[%s2407_s1 + $0xe8] sm:$0xff]  ;;  %2441 = vst [vmem:[#allocation17_spill] sm:$0xff] %v2158_v60  ;;  %v2169_v34 = vld [vmem:[%s2409_s3 + $0x10] sm:$0xff] }
 0x539   :  { %2439 = vst [vmem:[#allocation15_spill] sm:$0xff] %v2147_v57  ;;  %679 = vmatpush.msra.mxu2 %v2147_v57  ;;  %619 = vmatpush.msra.mxu0 %v2169_v34  ;;  %v2184_v57 = vld [vmem:[%s2407_s1 + $0x60] sm:$0xff] }
 0x53a   :  { %1674 = vpow2.f32 %v556_v25  ;;  %v2153_v25 = vld [vmem:[%s2407_s1 + $0xe0] sm:$0xff]  ;;  %2443 = vst [vmem:[#allocation19_spill] sm:$0xff] %v2169_v34 }
 0x53b   :  { %2440 = vst [vmem:[#allocation16_spill] sm:$0xff] %v2153_v25  ;;  %680 = vmatpush.msra.mxu2 %v2153_v25 }
 0x53c   :  { %2444 = vst [vmem:[#allocation20_spill] sm:$0xff] %v2175_v37  ;;  %1610 = vmatmul.msk.f32.vlgmr.msra.gmra.mxu2 %vm67_vm7, %v1860_v29 }
 0x53d   :  { %2445 = vst [vmem:[#allocation21_spill] sm:$0xff] %v2184_v57 }
 0x540   :  { %v1675_v26 = vpop.eup %1674 }
 0x541   :  { %v558_v27 = vsel %vm150_vm8, %v1675_v26, 0.0 }
 0x542   :  { %559 = vadd.xlane.f32.xlu2 %v558_v27  ;;  %v2163_v27 = vld [vmem:[%s2407_s1 + $0x70] sm:$0xff] }
 0x543   :  { %2442 = vst [vmem:[#allocation18_spill] sm:$0xff] %v2163_v27  ;;  %648 = vmatpush.msra.mxu1 %v2163_v27 }
 0x545   :  { %649 = vmatpush.msra.mxu1 %v2175_v37 }
 0x547   :  { %650 = vmatpush.msra.mxu1 %v2184_v57 }
 0x548   :  { %1604 = vmatmul.msk.f32.vlgmr.msra.gmra.mxu1 %vm67_vm7, %v1860_v29 }
 0x5b5   :  { %v560_v25 = vpop.xlane.xlu2 %559 }
 0x5b6   :  { %1676 = vrcp.f32 %v560_v25  ;;  %v572_v34 = vand.u32 2147483648, %v560_v25  ;;  %v570_v27 = vand.u32 2147483647, %v560_v25  ;;  %vm566_vm11 = vweird.f32 %v560_v25 }
 0x5b8   :  { %v573_v21 = vor.u32 1.1754944e-38, %v572_v34  ;;  %vm571_vm13 = vcmp.eq.f32.partialorder %v570_v27, 8.507059e+37  ;;  %v2259_v27 = vld [vmem:[%s2408_s2 + $0xb] ss:$0 sm:$0xff] }
 0x5bc   :  { %v1677_v54 = vpop.eup %1676 }
 0x5bd   :  { %v562_v59 = vmul.f32 %v1677_v54, %v560_v25  ;;  %vm567_vm10 = vweird.f32 %v1677_v54  ;;  %v818_v25 = vrot.slane %v1797_v7, 1  ;;  %v826_v7 = vrot.slane %v1824_v12, 4  ;;  %v2279_v12 = vld [vmem:[%s2409_s3 + $0x18] sm:$0xff] }
 0x5be   :  { %vm568_vm12 = vmor %vm566_vm11, %vm567_vm10  ;;  %808 = vmatpush.msrb.mxu2 %v2279_v12 }
 0x5bf   :  { %v563_v60 = vsub.f32 1.0, %v562_v59  ;;  %v682_v59 = vpop.f32.mrf.mxu2 }
 0x5c1   :  { %v564_v24 = vmul.f32 %v1677_v54, %v563_v60  ;;  %v683_v60 = vadd.f32 %v2194_v36, %v682_v59 }
 0x5c3   :  { %v565_v23 = vadd.f32 %v1677_v54, %v564_v24  ;;  %1617 = vmatpush.xpose.msk.msrb.mxu0 %vm150_vm8, %v683_v60 }
 0x5c5   :  { %v569_v19 = vsel %vm568_vm12, %v1677_v54, %v565_v23 }
 0x5c6   :  { %v574_v37 = vsel %vm571_vm13, %v573_v21, %v569_v19  ;;  %v2202_v19 = vld [vmem:[%s2408_s2 + $0x3] ss:$0 sm:$0xff]  ;;  %v652_v21 = vpop.f32.mrf.mxu1 }
 0x5c7   :  { %v575_v57 = vmul.f32 %v1675_v26, %v574_v37  ;;  %v653_v23 = vadd.f32 %v2202_v19, %v652_v21 }
 0x5c9   :  { %1596 = vmatmul.msk.f32.vlgmr.msra.gmra.mxu3 %vm150_vm8, %v575_v57 }
 0x64c   :  { %v596_v24 = vpop.f32.mrf.mxu3 }
 0x64d   :  { %1598 = vmatmul.msk.f32.vlgmr.msra.gmra.mxu0 %vm150_vm8, %v596_v24 }
 0x64e   :  { %866 = vmatpush.msra.mxu0 %v1760_v0  ;;  %v434_v0 = vadd.f32 %v2096_v33, %v410_v28 }
 0x650   :  { %867 = vmatpush.msra.mxu0 %v1765_v1 }
 0x652   :  { %868 = vmatpush.msra.mxu0 %v1777_v3 }
 0x654   :  { %869 = vmatpush.msra.mxu0 %v1787_v5  ;;  %v2221_v5 = vld [vmem:[%s2407_s1 + $0x178] sm:$0xff] }
 0x655   :  { %1618 = vmatmul.msk.f32.vlgmr.msrb.gmra.mxu0 %vm150_vm8, %v653_v23  ;;  %707 = vmatpush.msrb.mxu3 %v2221_v5 }
 0x656   :  { %979 = vmatpush.msrb.mxu0 %v1920_v44  ;;  %v2226_v44 = vld [vmem:[%s2407_s1 + $0x170] sm:$0xff] }
 0x657   :  { %708 = vmatpush.msrb.mxu3 %v2226_v44 }
 0x658   :  { %980 = vmatpush.msrb.mxu0 %v1927_v45  ;;  %v2232_v45 = vld [vmem:[%s2407_s1 + $0x168] sm:$0xff] }
 0x659   :  { %709 = vmatpush.msrb.mxu3 %v2232_v45 }
 0x65a   :  { %981 = vmatpush.msrb.mxu0 %v1937_v47  ;;  %v2238_v47 = vld [vmem:[%s2407_s1 + $0x160] sm:$0xff] }
 0x65b   :  { %710 = vmatpush.msrb.mxu3 %v2238_v47 }
 0x65c   :  { %982 = vmatpush.msrb.mxu0 %v1949_v49  ;;  %1616 = vmatmul.msk.f32.vlgmr.msrb.gmra.mxu3 %vm67_vm7, %v1860_v29  ;;  %v820_v29 = vrot.slane %v1809_v9, 7 }
 0x65d   :  { %846 = vmatpush.msra.mxu3 %v1770_v2  ;;  %v819_v2 = vsel %vm47_vm0, %v1802_v8, %v818_v25  ;;  %v828_v8 = vrot.slane %v1829_v13, 3 }
 0x65f   :  { %847 = vmatpush.msra.mxu3 %v1782_v4  ;;  %v822_v4 = vrot.slane %v1814_v10, 6 }
 0x661   :  { %848 = vmatpush.msra.mxu3 %v1792_v6  ;;  %v821_v6 = vsel %vm50_vm1, %v820_v29, %v819_v2 }
 0x662   :  { %v823_v34 = vsel %vm53_vm2, %v822_v4, %v821_v6 }
 0x663   :  { %849 = vmatpush.msra.mxu3 %v1844_v18  ;;  %v824_v18 = vrot.slane %v1819_v11, 5  ;;  %v830_v11 = vrot.slane %v1834_v14, 2 }
 0x665   :  { %v825_v9 = vsel %vm56_vm3, %v824_v18, %v823_v34 }
 0x666   :  { %v827_v60 = vsel %vm59_vm4, %v826_v7, %v825_v9 }
 0x667   :  { %v829_v24 = vsel %vm62_vm5, %v828_v8, %v827_v60  ;;  %v2446_v8 = vld [vmem:[#allocation5_spill] sm:$0xff]  ;;  %v2447_v60 = vld [vmem:[#allocation6_spill] sm:$0xff] }
 0x668   :  { %v2270_v21 = vsel %vm65_vm6, %v830_v11, %v829_v24 }
 0x669   :  { %1622 = vmatmul.msk.f32.vlgmr.msra.gmra.mxu3 %vm67_vm7, %v2270_v21  ;;  %1623 = vmatmul.msk.f32.vlgmr.msra.gmra.mxu0 %vm67_vm7, %v2270_v21 }
 0x671   :  { %1628 = vmatmul.msk.f32.vlgmr.msrb.gmra.mxu0 %vm67_vm7, %v2270_v21 }
 0x6ca   :  { %v621_v26 = vpop.f32.mrf.mxu0 }
 0x6cb   :  { %v2215_v1 = vadd.f32 %v621_v26, %v434_v0 }
 0x6d2   :  { %v738_v37 = vpop.f32.mrf.mxu0 }
 0x6d3   :  { %v741_v3 = vsel %vm150_vm8, %v738_v37, -inf }
 0x6d4   :  { %742 = vmax.xlane.f32.xlu0 %v741_v3 }
 0x6df   :  { %v712_v59 = vpop.f32.mrf.mxu3 }
 0x6e0   :  { %v713_v10 = vadd.f32 %v2259_v27, %v712_v59 }
 0x6e2   :  { %783 = vmatpush.msrb.mxu1 %v713_v10 }
 0x6e4   :  { %886 = vmatpush.msra.mxu1 %v1884_v38 }
 0x6e6   :  { %887 = vmatpush.msra.mxu1 %v1889_v39 }
 0x6e8   :  { %888 = vmatpush.msra.mxu1 %v1895_v40 }
 0x6ea   :  { %889 = vmatpush.msra.mxu1 %v1901_v41 }
 0x747   :  { %v743_v49 = vpop.xlane.xlu0 %742 }
 0x748   :  { %v744_v33 = vsub.f32 %v738_v37, %v743_v49 }
 0x74a   :  { %v745_v28 = vmul.f32 1.442695, %v744_v33 }
 0x74c   :  { %1678 = vpow2.f32 %v745_v28 }
 0x752   :  { %v1679_v54 = vpop.eup %1678 }
 0x753   :  { %v747_v57 = vsel %vm150_vm8, %v1679_v54, 0.0 }
 0x754   :  { %748 = vadd.xlane.f32.xlu1 %v747_v57 }
 0x7c7   :  { %v749_v13 = vpop.xlane.xlu1 %748 }
 0x7c8   :  { %1680 = vrcp.f32 %v749_v13  ;;  %v761_v26 = vand.u32 2147483648, %v749_v13  ;;  %v759_v3 = vand.u32 2147483647, %v749_v13  ;;  %vm755_vm1 = vweird.f32 %v749_v13 }
 0x7ca   :  { %v762_v38 = vor.u32 1.1754944e-38, %v761_v26  ;;  %vm760_vm3 = vcmp.eq.f32.partialorder %v759_v3, 8.507059e+37 }
 0x7ce   :  { %v1681_v14 = vpop.eup %1680 }
 0x7cf   :  { %v751_v23 = vmul.f32 %v1681_v14, %v749_v13  ;;  %vm756_vm0 = vweird.f32 %v1681_v14 }
 0x7d0   :  { %vm757_vm2 = vmor %vm755_vm1, %vm756_vm0 }
 0x7d1   :  { %v752_v0 = vsub.f32 1.0, %v751_v23 }
 0x7d3   :  { %v753_v37 = vmul.f32 %v1681_v14, %v752_v0 }
 0x7d5   :  { %v754_v49 = vadd.f32 %v1681_v14, %v753_v37 }
 0x7d7   :  { %v758_v39 = vsel %vm757_vm2, %v1681_v14, %v754_v49 }
 0x7d8   :  { %v763_v40 = vsel %vm760_vm3, %v762_v38, %v758_v39 }
 0x7d9   :  { %v764_v41 = vmul.f32 %v1679_v54, %v763_v40 }
 0x7db   :  { %1619 = vmatmul.msk.f32.vlgmr.msrb.gmra.mxu1 %vm150_vm8, %v764_v41 }
 0x7dc   :  { %999 = vmatpush.msrb.mxu1 %v1910_v42  ;;  %v871_v42 = vpop.f32.mrf.mxu0 }
 0x7de   :  { %1000 = vmatpush.msrb.mxu1 %v1915_v43  ;;  %v872_v43 = vadd.f32 %v1869_v30, %v871_v42 }
 0x7e0   :  { %1001 = vmatpush.msrb.mxu1 %v1932_v46  ;;  %1625 = vmatpush.xpose.msk.msra.mxu2 %vm150_vm8, %v872_v43 }
 0x7e2   :  { %1002 = vmatpush.msrb.mxu1 %v1944_v48  ;;  %v851_v48 = vpop.f32.mrf.mxu3 }
 0x7e3   :  { %1624 = vmatmul.msk.f32.vlgmr.msra.gmra.mxu1 %vm67_vm7, %v2270_v21 }
 0x7e4   :  { %1118 = vmatpush.msra.mxu1 %v2078_v56  ;;  %v852_v56 = vadd.f32 %v1874_v31, %v851_v48 }
 0x7eb   :  { %1629 = vmatmul.msk.f32.vlgmr.msrb.gmra.mxu1 %vm67_vm7, %v2270_v21 }
 0x7ec   :  { %1198 = vmatpush.msrb.mxu1 %v2102_v50 }
 0x7ee   :  { %1199 = vmatpush.msrb.mxu1 %v2107_v51 }
 0x7f0   :  { %1200 = vmatpush.msrb.mxu1 %v2114_v52 }
 0x7f2   :  { %1201 = vmatpush.msrb.mxu1 %v2119_v53 }
 0x858   :  { %v785_v46 = vpop.f32.mrf.mxu1 }
 0x859   :  { %1621 = vmatmul.msk.f32.vlgmr.msrb.gmra.mxu2 %vm150_vm8, %v785_v46 }
 0x85a   :  { %1019 = vmatpush.msrb.mxu2 %v1976_v61 }
 0x85c   :  { %1020 = vmatpush.msrb.mxu2 %v1981_v62 }
 0x85e   :  { %1021 = vmatpush.msrb.mxu2 %v1987_v63 }
 0x860   :  { %1022 = vmatpush.msrb.mxu2 %v1993_v16 }
 0x861   :  { %1626 = vmatmul.msk.f32.vlgmr.msra.gmra.mxu2 %vm150_vm8, %v852_v56  ;;  %v2451_v56 = vld [vmem:[#allocation19_spill] sm:$0xff] }
 0x862   :  { %1141 = vmatpush.msra.mxu2 %v2010_v35  ;;  %v891_v35 = vpop.f32.mrf.mxu1 }
 0x863   :  { %v892_v53 = vadd.f32 %v1963_v55, %v891_v35 }
 0x865   :  { %962 = vmatpush.msrb.mxu3 %v892_v53  ;;  %v2457_v53 = vld [vmem:[#allocation11_spill] sm:$0xff] }
 0x869   :  { %1630 = vmatmul.msk.f32.vlgmr.msrb.gmra.mxu2 %vm67_vm7, %v2270_v21 }
 0x86a   :  { %v1004_v33 = vpop.f32.mrf.mxu1 }
 0x8dc   :  { %v810_v30 = vpop.f32.mrf.mxu2 }
 0x8dd   :  { %v2315_v50 = vadd.f32 %v810_v30, %v2215_v1  ;;  %v1005_v1 = vadd.f32 %v1969_v58, %v1004_v33  ;;  %v984_v58 = vpop.f32.mrf.mxu0 }
 0x8de   :  { %v985_v59 = vadd.f32 %v2003_v32, %v984_v58  ;;  %v2450_v32 = vld [vmem:[#allocation9_spill] sm:$0xff] }
 0x8df   :  { %1631 = vmatpush.xpose.msk.msra.mxu3 %vm150_vm8, %v1005_v1  ;;  %v2458_v1 = vld [vmem:[#allocation13_spill] sm:$0xff] }
 0x8e4   :  { %v917_v61 = vpop.f32.mrf.mxu2 }
 0x8e5   :  { %v920_v62 = vsel %vm150_vm8, %v917_v61, -inf }
 0x8e6   :  { %921 = vmax.xlane.f32.xlu2 %v920_v62  ;;  %v2453_v62 = vld [vmem:[#allocation18_spill] sm:$0xff] }
 0x8ec   :  { %v1024_v9 = vpop.f32.mrf.mxu2 }
 0x8ed   :  { %v1025_v10 = vadd.f32 %v2446_v8, %v1024_v9 }
 0x8ef   :  { %1095 = vmatpush.msra.mxu0 %v1025_v10 }
 0x8f1   :  { %1178 = vmatpush.msrb.mxu0 %v2447_v60 }
 0x959   :  { %v922_v31 = vpop.xlane.xlu2 %921 }
 0x95a   :  { %v923_v51 = vsub.f32 %v917_v61, %v922_v31  ;;  %v2452_v61 = vld [vmem:[#allocation17_spill] sm:$0xff]  ;;  %v2454_v31 = vld [vmem:[#allocation20_spill] sm:$0xff] }
 0x95c   :  { %v924_v63 = vmul.f32 1.442695, %v923_v51 }
 0x95e   :  { %1682 = vpow2.f32 %v924_v63 }
 0x964   :  { %v1683_v16 = vpop.eup %1682 }
 0x965   :  { %v926_v52 = vsel %vm150_vm8, %v1683_v16, 0.0 }
 0x966   :  { %927 = vadd.xlane.f32.xlu0 %v926_v52  ;;  %v2456_v52 = vld [vmem:[#allocation10_spill] sm:$0xff] }
 0x9d9   :  { %v928_v28 = vpop.xlane.xlu0 %927 }
 0x9da   :  { %1684 = vrcp.f32 %v928_v28  ;;  %v940_v29 = vand.u32 2147483648, %v928_v28  ;;  %v938_v4 = vand.u32 2147483647, %v928_v28  ;;  %vm934_vm5 = vweird.f32 %v928_v28 }
 0x9dc   :  { %v941_v18 = vor.u32 1.1754944e-38, %v940_v29  ;;  %vm939_vm14 = vcmp.eq.f32.partialorder %v938_v4, 8.507059e+37 }
 0x9e0   :  { %v1685_v54 = vpop.eup %1684 }
 0x9e1   :  { %v930_v57 = vmul.f32 %v1685_v54, %v928_v28  ;;  %vm935_vm4 = vweird.f32 %v1685_v54  ;;  %v2459_v28 = vld [vmem:[#allocation14_spill] sm:$0xff] }
 0x9e2   :  { %vm936_vm6 = vmor %vm934_vm5, %vm935_vm4  ;;  %vm1500_vm5 = vcmask 1040384  }
 0x9e3   :  { %v931_v25 = vsub.f32 1.0, %v930_v57  ;;  %v2461_v57 = vld [vmem:[#allocation16_spill] sm:$0xff] }
 0x9e5   :  { %v932_v2 = vmul.f32 %v1685_v54, %v931_v25 }
 0x9e7   :  { %v933_v6 = vadd.f32 %v1685_v54, %v932_v2 }
 0x9e9   :  { %v937_v55 = vsel %vm936_vm6, %v1685_v54, %v933_v6  ;;  %v2460_v54 = vld [vmem:[#allocation15_spill] sm:$0xff]  ;;  %vm1509_vm6 = vcmask 254976  }
 0x9ea   :  { %v942_v34 = vsel %vm939_vm14, %v941_v18, %v937_v55 }
 0x9eb   :  { %v943_v7 = vmul.f32 %v1683_v16, %v942_v34  ;;  %v2455_v16 = vld [vmem:[#allocation21_spill] sm:$0xff] }
 0x9ed   :  { %1627 = vmatmul.msk.f32.vlgmr.msrb.gmra.mxu3 %vm150_vm8, %v943_v7 }
 0x9ee   :  { %1158 = vmatpush.msrb.mxu3 %v2025_v15  ;;  %v2448_v15 = vld [vmem:[#allocation7_spill] sm:$0xff] }
 0x9ef   :  { %1179 = vmatpush.msrb.mxu0 %v2448_v15 }
 0x9f0   :  { %1159 = vmatpush.msrb.mxu3 %v2031_v17  ;;  %v2449_v17 = vld [vmem:[#allocation8_spill] sm:$0xff] }
 0x9f1   :  { %1180 = vmatpush.msrb.mxu0 %v2449_v17 }
 0x9f2   :  { %1160 = vmatpush.msrb.mxu3 %v2042_v20 }
 0x9f3   :  { %1181 = vmatpush.msrb.mxu0 %v2450_v32 }
 0x9f4   :  { %1161 = vmatpush.msrb.mxu3 %v2053_v22 }
 0x9f5   :  { %1632 = vmatmul.msk.f32.vlgmr.msra.gmra.mxu3 %vm150_vm8, %v985_v59  ;;  %v2462_v59 = vld [vmem:[#allocation12_spill] sm:$0xff] }
 0x9fd   :  { %1636 = vmatmul.msk.f32.vlgmr.msrb.gmra.mxu3 %vm67_vm7, %v2270_v21 }
 0xa70   :  { %v964_v20 = vpop.f32.mrf.mxu3 }
 0xa71   :  { %1635 = vmatmul.msk.f32.vlgmr.msra.gmra.mxu2 %vm150_vm8, %v964_v20 }
 0xa78   :  { %v1050_v22 = vpop.f32.mrf.mxu3 }
 0xa79   :  { %v1053_v11 = vsel %vm150_vm8, %v1050_v22, -inf }
 0xa7a   :  { %1054 = vmax.xlane.f32.xlu1 %v1053_v11 }
 0xa80   :  { %v1163_v51 = vpop.f32.mrf.mxu3 }
 0xa81   :  { %v1164_v33 = vadd.f32 %v2457_v53, %v1163_v51 }
 0xaed   :  { %v1055_v24 = vpop.xlane.xlu1 %1054 }
 0xaee   :  { %v1056_v13 = vsub.f32 %v1050_v22, %v1055_v24 }
 0xaf0   :  { %v1057_v14 = vmul.f32 1.442695, %v1056_v13 }
 0xaf2   :  { %1686 = vpow2.f32 %v1057_v14 }
 0xaf4   :  { %v1143_v25 = vpop.f32.mrf.mxu2 }
 0xaf8   :  { %v1687_v23 = vpop.eup %1686 }
 0xaf9   :  { %v1059_v0 = vsel %vm150_vm8, %v1687_v23, 0.0 }
 0xafa   :  { %1060 = vadd.xlane.f32.xlu2 %v1059_v0 }
 0xb6d   :  { %v1061_v26 = vpop.xlane.xlu2 %1060 }
 0xb6e   :  { %1688 = vrcp.f32 %v1061_v26  ;;  %v1073_v38 = vand.u32 2147483648, %v1061_v26  ;;  %v1071_v40 = vand.u32 2147483647, %v1061_v26  ;;  %vm1067_vm9 = vweird.f32 %v1061_v26 }
 0xb70   :  { %v1074_v42 = vor.u32 1.1754944e-38, %v1073_v38  ;;  %vm1072_vm11 = vcmp.eq.f32.partialorder %v1071_v40, 8.507059e+37 }
 0xb74   :  { %v1689_v37 = vpop.eup %1688 }
 0xb75   :  { %v1063_v3 = vmul.f32 %v1689_v37, %v1061_v26  ;;  %vm1068_vm15 = vweird.f32 %v1689_v37 }
 0xb76   :  { %vm1069_vm10 = vmor %vm1067_vm9, %vm1068_vm15 }
 0xb77   :  { %v1064_v49 = vsub.f32 1.0, %v1063_v3 }
 0xb79   :  { %v1065_v39 = vmul.f32 %v1689_v37, %v1064_v49 }
 0xb7b   :  { %v1066_v41 = vadd.f32 %v1689_v37, %v1065_v39 }
 0xb7d   :  { %v1070_v43 = vsel %vm1069_vm10, %v1689_v37, %v1066_v41 }
 0xb7e   :  { %v1075_v46 = vsel %vm1072_vm11, %v1074_v42, %v1070_v43 }
 0xb7f   :  { %v1076_v48 = vmul.f32 %v1687_v23, %v1075_v46 }
 0xb81   :  { %1633 = vmatmul.msk.f32.vlgmr.msra.gmra.mxu0 %vm150_vm8, %v1076_v48 }
 0xb82   :  { %1297 = vmatpush.msra.mxu0 %v2451_v56 }
 0xb89   :  { %1637 = vmatmul.msk.f32.vlgmr.msrb.gmra.mxu0 %vm67_vm7, %v2270_v21 }
 0xbfe   :  { %v1097_v30 = vpop.f32.mrf.mxu0 }
 0xbff   :  { %1634 = vmatmul.msk.f32.vlgmr.msra.gmra.mxu1 %vm150_vm8, %v1097_v30 }
 0xc00   :  { %1315 = vmatpush.msra.mxu1 %v2452_v61 }
 0xc02   :  { %1316 = vmatpush.msra.mxu1 %v2453_v62 }
 0xc04   :  { %1317 = vmatpush.msra.mxu1 %v2454_v31 }
 0xc06   :  { %v1183_v63 = vpop.f32.mrf.mxu0  ;;  %1318 = vmatpush.msra.mxu1 %v2455_v16  ;;  %v1665_v16 = vld [vmem:[%s2410_s4] ss:$0 sm:$0xff]  ;;  %s1724_s4 = smov [#allocation2]  }
 0xc07   :  { %v1184_v35 = vadd.f32 %v2456_v52, %v1183_v63  ;;  %1638 = vmatmul.msk.f32.vlgmr.msrb.gmra.mxu1 %vm67_vm7, %v2270_v21  ;;  %v817_v52 = vadd.f32 %v1665_v16, %v2315_v50  ;;  %s1522_s6 = sshll.u32 %s1724_s4, 4  ;;  %s1523_s6 = int_to_ptr.vmem [resolvable:$true] %s1522_s6 }
 0xc09   :  { %1639 = vmatpush.xpose.msk.msrb.mxu2 %vm150_vm8, %v1184_v35 }
 0xc0c   :  { %1640 = vmatmul.msk.f32.vlgmr.msrb.gmra.mxu2 %vm150_vm8, %v1164_v33  ;;  %v1462_v33 = vrot.slane %v817_v52, 1 }
 0xc0d   :  { %1335 = vmatpush.msra.mxu2 %v2458_v1  ;;  %v1463_v1 = vrot.slane %v817_v52, 2 }
 0xc0f   :  { %1336 = vmatpush.msra.mxu2 %v2459_v28  ;;  %1643 = vmatmul.msk.f32.vlgmr.msra.gmra.mxu1 %vm67_vm7, %v2270_v21  ;;  %v1464_v28 = vrot.slane %v817_v52, 3 }
 0xc11   :  { %1337 = vmatpush.msra.mxu2 %v2460_v54  ;;  %v1465_v54 = vrot.slane %v817_v52, 4 }
 0xc13   :  { %1338 = vmatpush.msra.mxu2 %v2461_v57  ;;  %v1466_v57 = vrot.slane %v817_v52, 5 }
 0xc14   :  { %1644 = vmatmul.msk.f32.vlgmr.msra.gmra.mxu2 %vm67_vm7, %v2270_v21 }
 0xc15   :  { %1454 = vmatpush.msrb.mxu2 %v2279_v12 }
 0xc7c   :  { %v1120_v7 = vpop.f32.mrf.mxu1 }
 0xc7d   :  { %v1144_v23 = vadd.f32 %v1143_v25, %v1120_v7 }
 0xc84   :  { %v1203_v58 = vpop.f32.mrf.mxu1 }
 0xc85   :  { %v1204_v12 = vadd.f32 %v2462_v59, %v1203_v58 }
 0xc87   :  { %1274 = vmatpush.msra.mxu3 %v1204_v12 }
 0xc89   :  { %1355 = vmatpush.msrb.mxu3 %v2221_v5 }
 0xc8b   :  { %1356 = vmatpush.msrb.mxu3 %v2226_v44 }
 0xc8c   :  { %v1320_v13 = vpop.f32.mrf.mxu1 }
 0xc8d   :  { %1357 = vmatpush.msrb.mxu3 %v2232_v45  ;;  %v1321_v14 = vadd.f32 %v2202_v19, %v1320_v13 }
 0xc8f   :  { %v1229_v29 = vpop.f32.mrf.mxu2  ;;  %1358 = vmatpush.msrb.mxu3 %v2238_v47 }
 0xc90   :  { %v1232_v2 = vsel %vm150_vm8, %v1229_v29, -inf }
 0xc91   :  { %1233 = vmax.xlane.f32.xlu0 %v1232_v2  ;;  %v1468_v2 = vrot.slane %v817_v52, 7 }
 0xc97   :  { %v1340_v45 = vpop.f32.mrf.mxu2 }
 0xc98   :  { %v1341_v47 = vadd.f32 %v2194_v36, %v1340_v45 }
 0xc9a   :  { %1646 = vmatpush.xpose.msk.msrb.mxu0 %vm150_vm8, %v1341_v47 }
 0xd04   :  { %v1234_v4 = vpop.xlane.xlu0 %1233 }
 0xd05   :  { %v1235_v6 = vsub.f32 %v1229_v29, %v1234_v4  ;;  %v1467_v29 = vrot.slane %v817_v52, 6 }
 0xd07   :  { %v1236_v18 = vmul.f32 1.442695, %v1235_v6 }
 0xd09   :  { %1690 = vpow2.f32 %v1236_v18 }
 0xd0f   :  { %v1691_v55 = vpop.eup %1690 }
 0xd10   :  { %v1238_v34 = vsel %vm150_vm8, %v1691_v55, 0.0 }
 0xd11   :  { %1239 = vadd.xlane.f32.xlu1 %v1238_v34 }
 0xd84   :  { %v1240_v9 = vpop.xlane.xlu1 %1239 }
 0xd85   :  { %1692 = vrcp.f32 %v1240_v9  ;;  %v1252_v15 = vand.u32 2147483648, %v1240_v9  ;;  %v1250_v32 = vand.u32 2147483647, %v1240_v9  ;;  %vm1246_vm13 = vweird.f32 %v1240_v9 }
 0xd87   :  { %v1253_v22 = vor.u32 1.1754944e-38, %v1252_v15  ;;  %vm1251_vm1 = vcmp.eq.f32.partialorder %v1250_v32, 8.507059e+37 }
 0xd8b   :  { %v1693_v8 = vpop.eup %1692 }
 0xd8c   :  { %v1242_v10 = vmul.f32 %v1693_v8, %v1240_v9  ;;  %vm1247_vm12 = vweird.f32 %v1693_v8 }
 0xd8d   :  { %vm1248_vm0 = vmor %vm1246_vm13, %vm1247_vm12 }
 0xd8e   :  { %v1243_v60 = vsub.f32 1.0, %v1242_v10 }
 0xd90   :  { %v1244_v17 = vmul.f32 %v1693_v8, %v1243_v60 }
 0xd92   :  { %v1245_v20 = vadd.f32 %v1693_v8, %v1244_v17 }
 0xd94   :  { %v1249_v5 = vsel %vm1248_vm0, %v1693_v8, %v1245_v20 }
 0xd95   :  { %v1254_v44 = vsel %vm1251_vm1, %v1253_v22, %v1249_v5 }
 0xd96   :  { %v1255_v11 = vmul.f32 %v1691_v55, %v1254_v44 }
 0xd98   :  { %1641 = vmatmul.msk.f32.vlgmr.msra.gmra.mxu3 %vm150_vm8, %v1255_v11 }
 0xda0   :  { %1645 = vmatmul.msk.f32.vlgmr.msrb.gmra.mxu3 %vm67_vm7, %v2270_v21 }
 0xe1b   :  { %v1276_v24 = vpop.f32.mrf.mxu3 }
 0xe1c   :  { %1642 = vmatmul.msk.f32.vlgmr.msra.gmra.mxu0 %vm150_vm8, %v1276_v24 }
 0xe23   :  { %v1360_v40 = vpop.f32.mrf.mxu3 }
 0xe24   :  { %1647 = vmatmul.msk.f32.vlgmr.msrb.gmra.mxu0 %vm150_vm8, %v1321_v14  ;;  %v1361_v19 = vadd.f32 %v2259_v27, %v1360_v40 }
 0xe26   :  { %1431 = vmatpush.msrb.mxu1 %v1361_v19 }
 0xe99   :  { %v1299_v0 = vpop.f32.mrf.mxu0 }
 0xe9a   :  { %v1302_v26 = vadd.f32 %v1299_v0, %v1144_v23 }
 0xea1   :  { %v1386_v37 = vpop.f32.mrf.mxu0 }
 0xea2   :  { %v1389_v3 = vsel %vm150_vm8, %v1386_v37, -inf }
 0xea3   :  { %1390 = vmax.xlane.f32.xlu2 %v1389_v3 }
 0xf16   :  { %v1391_v21 = vpop.xlane.xlu2 %1390 }
 0xf17   :  { %v1392_v49 = vsub.f32 %v1386_v37, %v1391_v21 }
 0xf19   :  { %v1393_v36 = vmul.f32 1.442695, %v1392_v49 }
 0xf1b   :  { %1694 = vpow2.f32 %v1393_v36 }
 0xf21   :  { %v1695_v38 = vpop.eup %1694 }
 0xf22   :  { %v1395_v39 = vsel %vm150_vm8, %v1695_v38, 0.0 }
 0xf23   :  { %1396 = vadd.xlane.f32.xlu0 %v1395_v39 }
 0xf96   :  { %v1397_v41 = vpop.xlane.xlu0 %1396 }
 0xf97   :  { %1696 = vrcp.f32 %v1397_v41  ;;  %v1409_v48 = vand.u32 2147483648, %v1397_v41  ;;  %v1407_v30 = vand.u32 2147483647, %v1397_v41  ;;  %vm1403_vm2 = vweird.f32 %v1397_v41 }
 0xf99   :  { %v1410_v62 = vor.u32 1.1754944e-38, %v1409_v48  ;;  %vm1408_vm4 = vcmp.eq.f32.partialorder %v1407_v30, 8.507059e+37 }
 0xf9d   :  { %v1697_v42 = vpop.eup %1696 }
 0xf9e   :  { %v1399_v43 = vmul.f32 %v1697_v42, %v1397_v41  ;;  %vm1404_vm7 = vweird.f32 %v1697_v42 }
 0xf9f   :  { %vm1405_vm3 = vmor %vm1403_vm2, %vm1404_vm7 }
 0xfa0   :  { %v1400_v46 = vsub.f32 1.0, %v1399_v43 }
 0xfa2   :  { %v1401_v56 = vmul.f32 %v1697_v42, %v1400_v46 }
 0xfa4   :  { %v1402_v61 = vadd.f32 %v1697_v42, %v1401_v56 }
 0xfa6   :  { %v1406_v31 = vsel %vm1405_vm3, %v1697_v42, %v1402_v61 }
 0xfa7   :  { %v1411_v51 = vsel %vm1408_vm4, %v1410_v62, %v1406_v31 }
 0xfa8   :  { %v1412_v63 = vmul.f32 %v1695_v38, %v1411_v51 }
 0xfaa   :  { %1648 = vmatmul.msk.f32.vlgmr.msrb.gmra.mxu1 %vm150_vm8, %v1412_v63 }
0x1027   :  { %v1433_v27 = vpop.f32.mrf.mxu1 }
0x1028   :  { %1649 = vmatmul.msk.f32.vlgmr.msrb.gmra.mxu2 %vm150_vm8, %v1433_v27 }
0x10ab   :  { %v1456_v35 = vpop.f32.mrf.mxu2 }
0x10ac   :  { %v1459_v53 = vadd.f32 %v1456_v35, %v1302_v26 }
0x10ae   :  { %v1460_v25 = vadd.f32 %v1665_v16, %v1459_v53 }
0x10b0   :  { %v1477_v4 = vrot.slane %v1460_v25, 1  ;;  %v1478_v6 = vrot.slane %v1460_v25, 2  ;;  %v1479_v18 = vrot.slane %v1460_v25, 3  ;;  %v1480_v55 = vrot.slane %v1460_v25, 4 }
0x10b1   :  { %v1481_v34 = vrot.slane %v1460_v25, 5  ;;  %v1482_v7 = vrot.slane %v1460_v25, 6  ;;  %v1483_v58 = vrot.slane %v1460_v25, 7  ;;  %v1484_v50 = vperm.slane %v1460_v25, 0 }
0x10b2   :  { %v1485_v59 = vperm.slane %v1477_v4, 0  ;;  %v1486_v12 = vperm.slane %v1478_v6, 0  ;;  %v1487_v9 = vperm.slane %v1479_v18, 0  ;;  %v1488_v8 = vperm.slane %v1480_v55, 0 }
0x10b3   :  { %v1489_v10 = vperm.slane %v1481_v34, 0  ;;  %v1490_v60 = vperm.slane %v1482_v7, 0  ;;  %v1491_v15 = vperm.slane %v1483_v58, 0  ;;  %v1501_v17 = vsel %vm1500_vm5, %v817_v52, %v1484_v50 }
0x10b4   :  { %v1502_v32 = vsel %vm1500_vm5, %v1462_v33, %v1485_v59  ;;  %v1503_v20 = vsel %vm1500_vm5, %v1463_v1, %v1486_v12  ;;  %v1504_v22 = vsel %vm1500_vm5, %v1464_v28, %v1487_v9  ;;  %v1505_v5 = vsel %vm1500_vm5, %v1465_v54, %v1488_v8  ;;  %1510 = vst.msk [vmem:[#allocation2] sm:$0x3] %vm1509_vm6, %v1501_v17 }
0x10b5   :  { %v1506_v44 = vsel %vm1500_vm5, %v1466_v57, %v1489_v10  ;;  %v1507_v11 = vsel %vm1500_vm5, %v1467_v29, %v1490_v60  ;;  %v1508_v45 = vsel %vm1500_vm5, %v1468_v2, %v1491_v15  ;;  %1511 = vst.msk [vmem:[#allocation2 + $0x2] sm:$0x3] %vm1509_vm6, %v1502_v32 }
0x10b6   :  { %1512 = vst.msk [vmem:[#allocation2 + $0x4] sm:$0x3] %vm1509_vm6, %v1503_v20 }
0x10b7   :  { %1513 = vst.msk [vmem:[#allocation2 + $0x6] sm:$0x3] %vm1509_vm6, %v1504_v22 }
0x10b8   :  { %1514 = vst.msk [vmem:[#allocation2 + $0x8] sm:$0x3] %vm1509_vm6, %v1505_v5 }
0x10b9   :  { %1515 = vst.msk [vmem:[#allocation2 + $0xa] sm:$0x3] %vm1509_vm6, %v1506_v44 }
0x10ba   :  { %1516 = vst.msk [vmem:[#allocation2 + $0xc] sm:$0x3] %vm1509_vm6, %v1507_v11 }
0x10bb   :  { %1517 = vst.msk [vmem:[#allocation2 + $0xe] sm:$0x3] %vm1509_vm6, %v1508_v45 }
0x10bc   :  { %1530 = dma.vmem_to_hbm [thread:$0]  %s1523_s6, 256, %s1525_s9, [#allocation3], %s1725_s10, %s1725_s10, %s1726_s11  }
0x10bd   :  { %1722 = dma.done.wait [#allocation3], 256  }
0x10be   :  { %1723 = vsyncadd [#allocation3], 4294967040 }
0x10bf   :  { %1535 = vsyncpa [#allocation3], 1 }

</bundles_post_ra>
